<compile_context>
chip_gen: v7x
topology: tpu7x:2x2x1
jax: 0.10.0
libtpu: 0.0.40
codegen_flags: <defaults>
</compile_context>

<pallas_src>
import functools

import jax
import jax.numpy as jnp
from jax.experimental import pallas as pl
from jax.experimental.pallas import tpu as pltpu

BALL_DOWNSAMPLING_FACTOR = 4
PLAYER_DOWNSAMPLING_FACTOR = 16


# ----------------------------------------------------------------------------
# Fused kernel: one grid step == one image, whole network (channels-major).
# ----------------------------------------------------------------------------
def _make_kernel(c_feat, use_softmax):
    def kernel(x_ref, p1_ref, w1_ref, b1_ref, wcat_ref, bball_ref,
               p2_ref, b2_ref, wpr_ref, bpr_ref, ball_ref, pr_ref):
        bf16 = jnp.bfloat16
        x = x_ref[0].astype(bf16)                                            # (C, H*W)

        # ---- 4x4 average pool #1: lane contraction on the MXU
        x4 = jnp.dot(x, p1_ref[...], preferred_element_type=jnp.float32)    # (C, P4)

        # ---- base conv1 (1x1) + bias + ReLU, channels-major
        f0 = jnp.dot(w1_ref[...], x4.astype(bf16),
                     preferred_element_type=jnp.float32) + b1_ref[...]
        f0 = jnp.maximum(f0, 0.0).astype(bf16)                               # (Cf, P4)

        # ---- fused base-conv2 (pre-pool) + ball head: one matmul over f0
        g = jnp.dot(wcat_ref[...], f0, preferred_element_type=jnp.float32)  # (Cf+2, P4)
        yb = g[c_feat:, :] + bball_ref[...]                                  # (2, P4) ball logits

        # ---- 4x4 average pool #2 (conv2 commuted in front of it) + bias + ReLU
        f1 = jnp.dot(g[:c_feat, :].astype(bf16), p2_ref[...],
                     preferred_element_type=jnp.float32) + b2_ref[...]
        f1 = jnp.maximum(f1, 0.0).astype(bf16)                               # (Cf, P16)

        # ---- merged player classifier (2 rows) + bbox regressor (4 rows)
        ypr = jnp.dot(wpr_ref[...], f1,
                      preferred_element_type=jnp.float32) + bpr_ref[...]     # (6, P16)

        if use_softmax:
            # 2-class softmax == sigmoid of the logit difference (EUP tanh, no divide)
            tb = jnp.tanh(0.5 * (yb[1:2, :] - yb[0:1, :]))
            ball_ref[0] = jnp.concatenate(
                [0.5 * (1.0 - tb), 0.5 * (1.0 + tb)], axis=0)
            tp = jnp.tanh(0.5 * (ypr[1:2, :] - ypr[0:1, :]))
            pr_ref[0] = jnp.concatenate(
                [0.5 * (1.0 - tp), 0.5 * (1.0 + tp), ypr[2:, :]], axis=0)
        else:
            ball_ref[0] = yb
            pr_ref[0] = ypr

    return kernel


# ----------------------------------------------------------------------------
# FootAndBall forward
# ----------------------------------------------------------------------------
def footandball_forward(x_nchw, params, phase="eval"):
    assert phase in ("train", "eval", "detect")
    if phase == "detect":
        # TODO(synk): 'detect' phase (NMS, descending sort, score-threshold
        # filtering, ragged per-image dict outputs) has no clean Pallas equivalent.
        raise NotImplementedError("detect phase is not implemented as a Pallas kernel")

    n, c_in, height, width = x_nchw.shape
    assert height % PLAYER_DOWNSAMPLING_FACTOR == 0 and width % PLAYER_DOWNSAMPLING_FACTOR == 0, \
        "H and W must be multiples of 16"
    h4, w4 = height // BALL_DOWNSAMPLING_FACTOR, width // BALL_DOWNSAMPLING_FACTOR
    h16, w16 = height // PLAYER_DOWNSAMPLING_FACTOR, width // PLAYER_DOWNSAMPLING_FACTOR
    p4, p16 = h4 * w4, h16 * w16
    c_feat = params["base1_w"].shape[0]
    use_softmax = phase in ("eval", "detect")
    f32, bf16 = jnp.float32, jnp.bfloat16

    def pool_mat(npix):  # (npix, npix//4): column-group averaging over groups of 4
        return jnp.kron(jnp.eye(npix // 4, dtype=f32), jnp.ones((4, 1), f32)) * 0.25

    # pooling matrices as lane contractions (entries are powers of two -> exact in bf16)
    p1 = jnp.kron(pool_mat(height), pool_mat(width)).astype(bf16)        # (H*W, P4)
    p2 = jnp.kron(pool_mat(h4), pool_mat(w4)).astype(bf16)               # (P4, P16)

    # tiny channels-major conv weights (no kron expansion)
    w1 = params["base1_w"].astype(bf16)                                                   # (Cf, C)
    wcat = jnp.concatenate([params["base2_w"], params["ball_w"]], axis=0).astype(bf16)    # (Cf+2, Cf)
    wpr = jnp.concatenate([params["player_w"], params["reg_w"]], axis=0).astype(bf16)     # (6, Cf)

    # biases pre-broadcast to lane-dense slabs (f32, added after f32-accum matmuls)
    b1 = jnp.broadcast_to(params["base1_b"].astype(f32)[:, None], (c_feat, p4))
    bball = jnp.broadcast_to(params["ball_b"].astype(f32)[:, None], (2, p4))
    b2 = jnp.broadcast_to(params["base2_b"].astype(f32)[:, None], (c_feat, p16))
    bpr = jnp.broadcast_to(
        jnp.concatenate([params["player_b"], params["reg_b"]]).astype(f32)[:, None], (6, p16))

    # NCHW -> (N, C, H*W): free contiguous reshape; keep native dtype (cast in-kernel)
    xin = x_nchw.reshape(n, c_in, height * width)

    xmap = lambda i: (i, 0, 0)
    wmap = lambda i: (0, 0)

    ball_cm, pr_cm = pl.pallas_call(
        _make_kernel(c_feat, use_softmax),
        out_shape=(
            jax.ShapeDtypeStruct((n, 2, p4), f32),    # ball logits/probs, channels-major
            jax.ShapeDtypeStruct((n, 6, p16), f32),   # player(2) + bbox(4), channels-major
        ),
        grid_spec=pltpu.PrefetchScalarGridSpec(
            num_scalar_prefetch=0,
            grid=(n,),                                # one image per step; parallel for v7x 2 TCs
            in_specs=[
                pl.BlockSpec((1, c_in, height * width), xmap),
                pl.BlockSpec(p1.shape, wmap),
                pl.BlockSpec(w1.shape, wmap),
                pl.BlockSpec(b1.shape, wmap),
                pl.BlockSpec(wcat.shape, wmap),
                pl.BlockSpec(bball.shape, wmap),
                pl.BlockSpec(p2.shape, wmap),
                pl.BlockSpec(b2.shape, wmap),
                pl.BlockSpec(wpr.shape, wmap),
                pl.BlockSpec(bpr.shape, wmap),
            ],
            out_specs=(
                pl.BlockSpec((1, 2, p4), xmap),
                pl.BlockSpec((1, 6, p16), xmap),
            ),
        ),
        compiler_params=pltpu.CompilerParams(dimension_semantics=("parallel",)),
    )(xin, p1, w1, b1, wcat, bball, p2, b2, wpr, bpr)

    # tiny layout glue: channels-major -> NHWC (== module's permute(0, 2, 3, 1))
    ball_feature_map = ball_cm.reshape(n, 2, h4, w4).transpose(0, 2, 3, 1)
    player_feature_map = pr_cm[:, 0:2, :].reshape(n, 2, h16, w16).transpose(0, 2, 3, 1)
    player_bbox = pr_cm[:, 2:6, :].reshape(n, 4, h16, w16).transpose(0, 2, 3, 1)
    return player_bbox, player_feature_map, ball_feature_map


# ----------------------------------------------------------------------------
# Pure-JAX reference (same synthetic sub-networks), parameters, self-test
# ----------------------------------------------------------------------------
def _reference_forward(x_nchw, params, phase):
    x = jnp.transpose(x_nchw, (0, 2, 3, 1)).astype(jnp.float32)

    def pool4(t):
        nn, hh, ww, cc = t.shape
        return t.reshape(nn, hh // 4, 4, ww // 4, 4, cc).mean(axis=(2, 4))

    def conv1x1(t, w, b):        # w: (Cout, Cin), like a PyTorch 1x1 conv weight
        return jnp.einsum("nhwc,oc->nhwo", t, w.astype(jnp.float32)) + b

    f0 = jax.nn.relu(conv1x1(pool4(x), params["base1_w"], params["base1_b"]))
    f1 = jax.nn.relu(conv1x1(pool4(f0), params["base2_w"], params["base2_b"]))
    ball = conv1x1(f0, params["ball_w"], params["ball_b"])
    player = conv1x1(f1, params["player_w"], params["player_b"])
    bbox = conv1x1(f1, params["reg_w"], params["reg_b"])
    if phase in ("eval", "detect"):
        ball = jax.nn.softmax(ball, axis=-1)
        player = jax.nn.softmax(player, axis=-1)
    return bbox, player, ball


def init_params(key, c_in=3, c_feat=16):
    ks = jax.random.split(key, 10)

    def conv1x1(kw, kb, cin, cout):
        w = jax.random.normal(kw, (cout, cin), jnp.float32) * (1.0 / jnp.sqrt(cin))
        b = 0.1 * jax.random.normal(kb, (cout,), jnp.float32)
        return w, b

    base1_w, base1_b = conv1x1(ks[0], ks[1], c_in, c_feat)
    base2_w, base2_b = conv1x1(ks[2], ks[3], c_feat, c_feat)
    ball_w, ball_b = conv1x1(ks[4], ks[5], c_feat, 2)
    player_w, player_b = conv1x1(ks[6], ks[7], c_feat, 2)
    reg_w, reg_b = conv1x1(ks[8], ks[9], c_feat, 4)
    return dict(base1_w=base1_w, base1_b=base1_b, base2_w=base2_w, base2_b=base2_b,
                ball_w=ball_w, ball_b=ball_b, player_w=player_w, player_b=player_b,
                reg_w=reg_w, reg_b=reg_b)


if __name__ == "__main__":
    key = jax.random.PRNGKey(0)
    k_x, k_p = jax.random.split(key)

    # NCHW input, like the PyTorch module: batch=2, 3 channels, 64x64 image.
    x = jax.random.normal(k_x, (2, 3, 64, 64), jnp.float32)
    params = init_params(k_p, c_in=3, c_feat=16)

    for phase in ("eval", "train"):
        fwd = jax.jit(functools.partial(footandball_forward, phase=phase))
        player_bbox, player_feature_map, ball_feature_map = fwd(x, params)
        jax.block_until_ready((player_bbox, player_feature_map, ball_feature_map))

        # shapes match the module's train/eval output contract (channels-last)
        assert player_bbox.shape == (2, 4, 4, 4)
        assert player_feature_map.shape == (2, 4, 4, 2)
        assert ball_feature_map.shape == (2, 16, 16, 2)

        # numerical parity with a plain-JAX f32 reference (bf16 MXU operands ->
        # compare at bf16-appropriate tolerances)
        ref_bbox, ref_player, ref_ball = _reference_forward(x, params, phase)
        assert bool(jnp.allclose(player_bbox, ref_bbox, atol=2e-2, rtol=2e-2))
        assert bool(jnp.allclose(player_feature_map, ref_player, atol=2e-2, rtol=2e-2))
        assert bool(jnp.allclose(ball_feature_map, ref_ball, atol=2e-2, rtol=2e-2))

        if phase == "eval":
            assert bool(jnp.allclose(player_feature_map.sum(-1), 1.0, atol=1e-3))
            assert bool(jnp.allclose(ball_feature_map.sum(-1), 1.0, atol=1e-3))

    print("KERNEL_OK")
</pallas_src>

<mosaic_0001>
module attributes {stable_mosaic.version = 11 : i64} {
  func.func @kernel(%arg0: i32, %arg1: memref<1x3x4096xf32, #tpu.memory_space<vmem>>, %arg2: memref<4096x256xbf16, #tpu.memory_space<vmem>>, %arg3: memref<16x3xbf16, #tpu.memory_space<vmem>>, %arg4: memref<16x256xf32, #tpu.memory_space<vmem>>, %arg5: memref<18x16xbf16, #tpu.memory_space<vmem>>, %arg6: memref<2x256xf32, #tpu.memory_space<vmem>>, %arg7: memref<256x16xbf16, #tpu.memory_space<vmem>>, %arg8: memref<16x16xf32, #tpu.memory_space<vmem>>, %arg9: memref<6x16xbf16, #tpu.memory_space<vmem>>, %arg10: memref<6x16xf32, #tpu.memory_space<vmem>>, %arg11: memref<1x2x256xf32, #tpu.memory_space<vmem>>, %arg12: memref<1x6x16xf32, #tpu.memory_space<vmem>>) attributes {dimension_semantics = [#tpu.dimension_semantics<parallel>], iteration_bounds = array<i64: 2>, scalar_prefetch = 0 : i64, scratch_operands = 0 : i64, tpu.core_type = #tpu.core_type<tc>, window_params = [{transform_indices = @transform_0, window_bounds = array<i64: 1, 3, 4096>}, {pipeline_mode = #tpu.pipeline_mode<synchronous>, transform_indices = @transform_1, window_bounds = array<i64: 4096, 256>}, {pipeline_mode = #tpu.pipeline_mode<synchronous>, transform_indices = @transform_2, window_bounds = array<i64: 16, 3>}, {pipeline_mode = #tpu.pipeline_mode<synchronous>, transform_indices = @transform_3, window_bounds = array<i64: 16, 256>}, {pipeline_mode = #tpu.pipeline_mode<synchronous>, transform_indices = @transform_4, window_bounds = array<i64: 18, 16>}, {pipeline_mode = #tpu.pipeline_mode<synchronous>, transform_indices = @transform_5, window_bounds = array<i64: 2, 256>}, {pipeline_mode = #tpu.pipeline_mode<synchronous>, transform_indices = @transform_6, window_bounds = array<i64: 256, 16>}, {pipeline_mode = #tpu.pipeline_mode<synchronous>, transform_indices = @transform_7, window_bounds = array<i64: 16, 16>}, {pipeline_mode = #tpu.pipeline_mode<synchronous>, transform_indices = @transform_8, window_bounds = array<i64: 6, 16>}, {pipeline_mode = #tpu.pipeline_mode<synchronous>, transform_indices = @transform_9, window_bounds = array<i64: 6, 16>}, {transform_indices = @transform_10, window_bounds = array<i64: 1, 2, 256>}, {transform_indices = @transform_11, window_bounds = array<i64: 1, 6, 16>}]} {
    %c0 = arith.constant 0 : index
    %c0_0 = arith.constant 0 : index
    %c0_1 = arith.constant 0 : index
    %0 = vector.load %arg1[%c0, %c0_0, %c0_1] : memref<1x3x4096xf32, #tpu.memory_space<vmem>>, vector<1x3x4096xf32>
    %1 = vector.shape_cast %0 : vector<1x3x4096xf32> to vector<3x4096xf32>
    %2 = arith.truncf %1 : vector<3x4096xf32> to vector<3x4096xbf16>
    %c0_2 = arith.constant 0 : index
    %c0_3 = arith.constant 0 : index
    %3 = vector.load %arg2[%c0_2, %c0_3] : memref<4096x256xbf16, #tpu.memory_space<vmem>>, vector<4096x256xbf16>
    %cst = arith.constant dense<0.000000e+00> : vector<3x256xf32>
    %4 = tpu.matmul %2, %3, %cst {dimension_numbers = #tpu.dot_dimension_numbers<[1], [0], [0], [1], [0, 0, 1, 1], [], []>} : vector<3x4096xbf16>, vector<4096x256xbf16>, vector<3x256xf32> -> vector<3x256xf32>
    %c0_4 = arith.constant 0 : index
    %c0_5 = arith.constant 0 : index
    %5 = vector.load %arg3[%c0_4, %c0_5] : memref<16x3xbf16, #tpu.memory_space<vmem>>, vector<16x3xbf16>
    %6 = arith.truncf %4 : vector<3x256xf32> to vector<3x256xbf16>
    %cst_6 = arith.constant dense<0.000000e+00> : vector<16x256xf32>
    %7 = tpu.matmul %5, %6, %cst_6 {dimension_numbers = #tpu.dot_dimension_numbers<[1], [0], [0], [1], [0, 0, 1, 1], [], []>} : vector<16x3xbf16>, vector<3x256xbf16>, vector<16x256xf32> -> vector<16x256xf32>
    %c0_7 = arith.constant 0 : index
    %c0_8 = arith.constant 0 : index
    %8 = vector.load %arg4[%c0_7, %c0_8] : memref<16x256xf32, #tpu.memory_space<vmem>>, vector<16x256xf32>
    %9 = arith.addf %7, %8 : vector<16x256xf32>
    %cst_9 = arith.constant 0.000000e+00 : f32
    %10 = vector.broadcast %cst_9 : f32 to vector<16x256xf32>
    %11 = arith.maximumf %9, %10 : vector<16x256xf32>
    %12 = arith.truncf %11 : vector<16x256xf32> to vector<16x256xbf16>
    %c0_10 = arith.constant 0 : index
    %c0_11 = arith.constant 0 : index
    %13 = vector.load %arg5[%c0_10, %c0_11] : memref<18x16xbf16, #tpu.memory_space<vmem>>, vector<18x16xbf16>
    %cst_12 = arith.constant dense<0.000000e+00> : vector<18x256xf32>
    %14 = tpu.matmul %13, %12, %cst_12 {dimension_numbers = #tpu.dot_dimension_numbers<[1], [0], [0], [1], [0, 0, 1, 1], [], []>} : vector<18x16xbf16>, vector<16x256xbf16>, vector<18x256xf32> -> vector<18x256xf32>
    %15 = vector.extract_strided_slice %14 {offsets = [16, 0], sizes = [2, 256], strides = [1, 1]} : vector<18x256xf32> to vector<2x256xf32>
    %c0_13 = arith.constant 0 : index
    %c0_14 = arith.constant 0 : index
    %16 = vector.load %arg6[%c0_13, %c0_14] : memref<2x256xf32, #tpu.memory_space<vmem>>, vector<2x256xf32>
    %17 = arith.addf %15, %16 : vector<2x256xf32>
    %18 = vector.extract_strided_slice %14 {offsets = [0, 0], sizes = [16, 256], strides = [1, 1]} : vector<18x256xf32> to vector<16x256xf32>
    %19 = arith.truncf %18 : vector<16x256xf32> to vector<16x256xbf16>
    %c0_15 = arith.constant 0 : index
    %c0_16 = arith.constant 0 : index
    %20 = vector.load %arg7[%c0_15, %c0_16] : memref<256x16xbf16, #tpu.memory_space<vmem>>, vector<256x16xbf16>
    %cst_17 = arith.constant dense<0.000000e+00> : vector<16x16xf32>
    %21 = tpu.matmul %19, %20, %cst_17 {dimension_numbers = #tpu.dot_dimension_numbers<[1], [0], [0], [1], [0, 0, 1, 1], [], []>} : vector<16x256xbf16>, vector<256x16xbf16>, vector<16x16xf32> -> vector<16x16xf32>
    %c0_18 = arith.constant 0 : index
    %c0_19 = arith.constant 0 : index
    %22 = vector.load %arg8[%c0_18, %c0_19] : memref<16x16xf32, #tpu.memory_space<vmem>>, vector<16x16xf32>
    %23 = arith.addf %21, %22 : vector<16x16xf32>
    %cst_20 = arith.constant 0.000000e+00 : f32
    %24 = vector.broadcast %cst_20 : f32 to vector<16x16xf32>
    %25 = arith.maximumf %23, %24 : vector<16x16xf32>
    %26 = arith.truncf %25 : vector<16x16xf32> to vector<16x16xbf16>
    %c0_21 = arith.constant 0 : index
    %c0_22 = arith.constant 0 : index
    %27 = vector.load %arg9[%c0_21, %c0_22] : memref<6x16xbf16, #tpu.memory_space<vmem>>, vector<6x16xbf16>
    %cst_23 = arith.constant dense<0.000000e+00> : vector<6x16xf32>
    %28 = tpu.matmul %27, %26, %cst_23 {dimension_numbers = #tpu.dot_dimension_numbers<[1], [0], [0], [1], [0, 0, 1, 1], [], []>} : vector<6x16xbf16>, vector<16x16xbf16>, vector<6x16xf32> -> vector<6x16xf32>
    %c0_24 = arith.constant 0 : index
    %c0_25 = arith.constant 0 : index
    %29 = vector.load %arg10[%c0_24, %c0_25] : memref<6x16xf32, #tpu.memory_space<vmem>>, vector<6x16xf32>
    %30 = arith.addf %28, %29 : vector<6x16xf32>
    %31 = vector.extract_strided_slice %17 {offsets = [1, 0], sizes = [1, 256], strides = [1, 1]} : vector<2x256xf32> to vector<1x256xf32>
    %32 = vector.extract_strided_slice %17 {offsets = [0, 0], sizes = [1, 256], strides = [1, 1]} : vector<2x256xf32> to vector<1x256xf32>
    %33 = arith.subf %31, %32 : vector<1x256xf32>
    %cst_26 = arith.constant 5.000000e-01 : f32
    %34 = vector.broadcast %cst_26 : f32 to vector<1x256xf32>
    %35 = arith.mulf %34, %33 : vector<1x256xf32>
    %36 = math.tanh %35 : vector<1x256xf32>
    %cst_27 = arith.constant 1.000000e+00 : f32
    %37 = vector.broadcast %cst_27 : f32 to vector<1x256xf32>
    %38 = arith.subf %37, %36 : vector<1x256xf32>
    %cst_28 = arith.constant 5.000000e-01 : f32
    %39 = vector.broadcast %cst_28 : f32 to vector<1x256xf32>
    %40 = arith.mulf %39, %38 : vector<1x256xf32>
    %cst_29 = arith.constant 1.000000e+00 : f32
    %41 = vector.broadcast %cst_29 : f32 to vector<1x256xf32>
    %42 = arith.addf %41, %36 : vector<1x256xf32>
    %cst_30 = arith.constant 5.000000e-01 : f32
    %43 = vector.broadcast %cst_30 : f32 to vector<1x256xf32>
    %44 = arith.mulf %43, %42 : vector<1x256xf32>
    %45 = tpu.concatenate %40, %44 in 0 : vector<1x256xf32>, vector<1x256xf32> -> vector<2x256xf32>
    %c0_31 = arith.constant 0 : index
    %c0_32 = arith.constant 0 : index
    %c0_33 = arith.constant 0 : index
    %46 = vector.load %arg11[%c0_31, %c0_32, %c0_33] : memref<1x2x256xf32, #tpu.memory_space<vmem>>, vector<1x2x256xf32>
    %47 = vector.shape_cast %46 : vector<1x2x256xf32> to vector<2x256xf32>
    %48 = vector.shape_cast %45 : vector<2x256xf32> to vector<1x2x256xf32>
    tpu.vector_store %arg11[%c0_31, %c0_32, %c0_33], %48 {strides = array<i32>} : memref<1x2x256xf32, #tpu.memory_space<vmem>>, vector<1x2x256xf32>,
    %49 = vector.extract_strided_slice %30 {offsets = [1, 0], sizes = [1, 16], strides = [1, 1]} : vector<6x16xf32> to vector<1x16xf32>
    %50 = vector.extract_strided_slice %30 {offsets = [0, 0], sizes = [1, 16], strides = [1, 1]} : vector<6x16xf32> to vector<1x16xf32>
    %51 = arith.subf %49, %50 : vector<1x16xf32>
    %cst_34 = arith.constant 5.000000e-01 : f32
    %52 = vector.broadcast %cst_34 : f32 to vector<1x16xf32>
    %53 = arith.mulf %52, %51 : vector<1x16xf32>
    %54 = math.tanh %53 : vector<1x16xf32>
    %cst_35 = arith.constant 1.000000e+00 : f32
    %55 = vector.broadcast %cst_35 : f32 to vector<1x16xf32>
    %56 = arith.subf %55, %54 : vector<1x16xf32>
    %cst_36 = arith.constant 5.000000e-01 : f32
    %57 = vector.broadcast %cst_36 : f32 to vector<1x16xf32>
    %58 = arith.mulf %57, %56 : vector<1x16xf32>
    %cst_37 = arith.constant 1.000000e+00 : f32
    %59 = vector.broadcast %cst_37 : f32 to vector<1x16xf32>
    %60 = arith.addf %59, %54 : vector<1x16xf32>
    %cst_38 = arith.constant 5.000000e-01 : f32
    %61 = vector.broadcast %cst_38 : f32 to vector<1x16xf32>
    %62 = arith.mulf %61, %60 : vector<1x16xf32>
    %63 = vector.extract_strided_slice %30 {offsets = [2, 0], sizes = [4, 16], strides = [1, 1]} : vector<6x16xf32> to vector<4x16xf32>
    %64 = tpu.concatenate %58, %62, %63 in 0 : vector<1x16xf32>, vector<1x16xf32>, vector<4x16xf32> -> vector<6x16xf32>
    %c0_39 = arith.constant 0 : index
    %c0_40 = arith.constant 0 : index
    %c0_41 = arith.constant 0 : index
    %65 = vector.load %arg12[%c0_39, %c0_40, %c0_41] : memref<1x6x16xf32, #tpu.memory_space<vmem>>, vector<1x6x16xf32>
    %66 = vector.shape_cast %65 : vector<1x6x16xf32> to vector<6x16xf32>
    %67 = vector.shape_cast %64 : vector<6x16xf32> to vector<1x6x16xf32>
    tpu.vector_store %arg12[%c0_39, %c0_40, %c0_41], %67 {strides = array<i32>} : memref<1x6x16xf32, #tpu.memory_space<vmem>>, vector<1x6x16xf32>,
    return
  }
  func.func @transform_0(%arg0: i32) -> (i32, i32, i32) {
    %c0_i32 = arith.constant 0 : i32
    %c0_i32_0 = arith.constant 0 : i32
    %c0_i32_1 = arith.constant 0 : i32
    return %arg0, %c0_i32, %c0_i32_0 : i32, i32, i32
  }
  func.func @transform_1(%arg0: i32) -> (i32, i32) {
    %c0_i32 = arith.constant 0 : i32
    %c0_i32_0 = arith.constant 0 : i32
    %c0_i32_1 = arith.constant 0 : i32
    return %c0_i32, %c0_i32_0 : i32, i32
  }
  func.func @transform_2(%arg0: i32) -> (i32, i32) {
    %c0_i32 = arith.constant 0 : i32
    %c0_i32_0 = arith.constant 0 : i32
    %c0_i32_1 = arith.constant 0 : i32
    return %c0_i32, %c0_i32_0 : i32, i32
  }
  func.func @transform_3(%arg0: i32) -> (i32, i32) {
    %c0_i32 = arith.constant 0 : i32
    %c0_i32_0 = arith.constant 0 : i32
    %c0_i32_1 = arith.constant 0 : i32
    return %c0_i32, %c0_i32_0 : i32, i32
  }
  func.func @transform_4(%arg0: i32) -> (i32, i32) {
    %c0_i32 = arith.constant 0 : i32
    %c0_i32_0 = arith.constant 0 : i32
    %c0_i32_1 = arith.constant 0 : i32
    return %c0_i32, %c0_i32_0 : i32, i32
  }
  func.func @transform_5(%arg0: i32) -> (i32, i32) {
    %c0_i32 = arith.constant 0 : i32
    %c0_i32_0 = arith.constant 0 : i32
    %c0_i32_1 = arith.constant 0 : i32
    return %c0_i32, %c0_i32_0 : i32, i32
  }
  func.func @transform_6(%arg0: i32) -> (i32, i32) {
    %c0_i32 = arith.constant 0 : i32
    %c0_i32_0 = arith.constant 0 : i32
    %c0_i32_1 = arith.constant 0 : i32
    return %c0_i32, %c0_i32_0 : i32, i32
  }
  func.func @transform_7(%arg0: i32) -> (i32, i32) {
    %c0_i32 = arith.constant 0 : i32
    %c0_i32_0 = arith.constant 0 : i32
    %c0_i32_1 = arith.constant 0 : i32
    return %c0_i32, %c0_i32_0 : i32, i32
  }
  func.func @transform_8(%arg0: i32) -> (i32, i32) {
    %c0_i32 = arith.constant 0 : i32
    %c0_i32_0 = arith.constant 0 : i32
    %c0_i32_1 = arith.constant 0 : i32
    return %c0_i32, %c0_i32_0 : i32, i32
  }
  func.func @transform_9(%arg0: i32) -> (i32, i32) {
    %c0_i32 = arith.constant 0 : i32
    %c0_i32_0 = arith.constant 0 : i32
    %c0_i32_1 = arith.constant 0 : i32
    return %c0_i32, %c0_i32_0 : i32, i32
  }
  func.func @transform_10(%arg0: i32) -> (i32, i32, i32) {
    %c0_i32 = arith.constant 0 : i32
    %c0_i32_0 = arith.constant 0 : i32
    %c0_i32_1 = arith.constant 0 : i32
    return %arg0, %c0_i32, %c0_i32_0 : i32, i32, i32
  }
  func.func @transform_11(%arg0: i32) -> (i32, i32, i32) {
    %c0_i32 = arith.constant 0 : i32
    %c0_i32_0 = arith.constant 0 : i32
    %c0_i32_1 = arith.constant 0 : i32
    return %arg0, %c0_i32, %c0_i32_0 : i32, i32, i32
  }
}

</mosaic_0001>

<bundles_post_ra>
// kernel: footandball_forward.1
= control target key start
LH: loop header
LB: loop body
LE: loop exit
PB: predicated region body
PF: predicated region fallthrough
CT: control target
= control target key end

     0   :  { %s6278_s17 = smov 0   ;;  %s8041_s0 = inlined_call_operand.vmem [shape: f32[2,3,4096], index: 0, kind: input, shape index: {}]   ;;  %s8042_s1 = inlined_call_operand.vmem [shape: bf16[4096,256], index: 1, kind: input, shape index: {}]   ;;  %s8043_s2 = inlined_call_operand.vmem [shape: bf16[16,3], index: 2, kind: input, shape index: {}]   ;;  %s8044_s3 = inlined_call_operand.vmem [shape: f32[16,256], index: 3, kind: input, shape index: {}]   ;;  %s8045_s4 = inlined_call_operand.vmem [shape: bf16[18,16], index: 4, kind: input, shape index: {}]   ;;  %s8046_s5 = inlined_call_operand.vmem [shape: f32[2,256], index: 5, kind: input, shape index: {}]   ;;  %s8047_s6 = inlined_call_operand.vmem [shape: bf16[256,16], index: 6, kind: input, shape index: {}]   ;;  %s8048_s7 = inlined_call_operand.vmem [shape: f32[16,16], index: 7, kind: input, shape index: {}]   ;;  %s8049_s8 = inlined_call_operand.vmem [shape: bf16[6,16], index: 8, kind: input, shape index: {}]   ;;  %s8050_s9 = inlined_call_operand.vmem [shape: f32[6,16], index: 9, kind: input, shape index: {}]   ;;  %s8051_s10 = inlined_call_operand.vmem [shape: f32[2,2,256], index: 10, kind: output, shape index: {0}]   ;;  %s8052_s11 = inlined_call_operand.vmem [shape: f32[2,6,16], index: 11, kind: output, shape index: {1}]  }
   0x1 LB: > { %s4746_s18 = sadd.s32 4294967295, %s6212_s17   ;;  %p4750_p0 = scmp.ge.s32.totalorder %s6212_s17, 1  ;;  %s6212_s17 = sphi %s6278_s17, %s22_s17  }
   0x2   : > { %p340_p1 = scmp.lt.s32.totalorder %s6212_s17, 3 }
   0x4   : > { %p341_p2 = pnand %p4750_p0, %p340_p1 }
   0x5   : > { %v5397_v0 = vld [vmem:[%s8042_s1 + $0x4] ss:$8 sps:$4 sm:$0xff] (!%p341_p2)   ;;  %v5401_v2 = vld [vmem:[%s8042_s1] ss:$8 sps:$4 sm:$0xff] (!%p341_p2)   ;;  %v5403_v4 = vld [vmem:[%s8042_s1 + $0x14] ss:$8 sps:$4 sm:$0xff] (!%p341_p2)  }
   0x6   : > { %344 = sbr.rel (%p341_p2) target bundleno = 1651 (0x673), region = 60  ;;  %v5399_v1 = vld [vmem:[%s8042_s1 + $0x804] ss:$8 sps:$4 sm:$0xff] (!%p341_p2)   ;;  %3567 = vmatprep.subr.bf16.mxu1 (!%p341_p2), %v5397_v0  ;;  %v5402_v3 = vld [vmem:[%s8042_s1 + $0x800] ss:$8 sps:$4 sm:$0xff] (!%p341_p2)   ;;  %p384_p3 = scmp.lt.s32.totalorder (!%p341_p2), %s4746_s18, 1 }
   0x7   : > { %3895 = vmatprep.subr.bf16.mxu0 (!%p341_p2), %v5399_v1  ;;  %3568 = vmatpush1.bf16.msra.mxu1 (!%p341_p2), %v5401_v2  ;;  %v5405_v5 = vld [vmem:[%s8042_s1 + $0x814] ss:$8 sps:$4 sm:$0xff] (!%p341_p2)   ;;  %v5407_v6 = vld [vmem:[%s8042_s1 + $0x10] ss:$8 sps:$4 sm:$0xff] (!%p341_p2)   ;;  %v5409_v8 = vld [vmem:[%s8042_s1 + $0x24] ss:$8 sps:$4 sm:$0xff] (!%p341_p2)  }
   0x8   : > { %3896 = vmatpush1.bf16.msra.mxu0 (!%p341_p2), %v5402_v3  ;;  %3569 = vmatprep.subr.bf16.mxu1 (!%p341_p2), %v5403_v4  ;;  %v5408_v7 = vld [vmem:[%s8042_s1 + $0x810] ss:$8 sps:$4 sm:$0xff] (!%p341_p2)   ;;  %v5411_v9 = vld [vmem:[%s8042_s1 + $0x824] ss:$8 sps:$4 sm:$0xff] (!%p341_p2)   ;;  %v5413_v10 = vld [vmem:[%s8042_s1 + $0x20] ss:$8 sps:$4 sm:$0xff] (!%p341_p2)  }
   0x9   : > { %3897 = vmatprep.subr.bf16.mxu0 (!%p341_p2), %v5405_v5  ;;  %v5414_v11 = vld [vmem:[%s8042_s1 + $0x820] ss:$8 sps:$4 sm:$0xff] (!%p341_p2)   ;;  %v5415_v12 = vld [vmem:[%s8042_s1 + $0x34] ss:$8 sps:$4 sm:$0xff] (!%p341_p2)   ;;  %v5419_v14 = vld [vmem:[%s8042_s1 + $0x30] ss:$8 sps:$4 sm:$0xff] (!%p341_p2)  }
   0xa   : > { %v5417_v13 = vld [vmem:[%s8042_s1 + $0x834] ss:$8 sps:$4 sm:$0xff] (!%p341_p2)   ;;  %v5420_v15 = vld [vmem:[%s8042_s1 + $0x830] ss:$8 sps:$4 sm:$0xff] (!%p341_p2)   ;;  %v5421_v16 = vld [vmem:[%s8042_s1 + $0x44] ss:$8 sps:$4 sm:$0xff] (!%p341_p2)  }
   0xb   : > { %3570 = vmatpush1.bf16.msra.mxu1 (!%p341_p2), %v5407_v6  ;;  %v5423_v17 = vld [vmem:[%s8042_s1 + $0x844] ss:$8 sps:$4 sm:$0xff] (!%p341_p2)   ;;  %v5425_v18 = vld [vmem:[%s8042_s1 + $0x40] ss:$8 sps:$4 sm:$0xff] (!%p341_p2)   ;;  %v5427_v20 = vld [vmem:[%s8042_s1 + $0x54] ss:$8 sps:$4 sm:$0xff] (!%p341_p2)  }
   0xc   : > { %3898 = vmatpush1.bf16.msra.mxu0 (!%p341_p2), %v5408_v7  ;;  %3571 = vmatprep.subr.bf16.mxu1 (!%p341_p2), %v5409_v8  ;;  %v5426_v19 = vld [vmem:[%s8042_s1 + $0x840] ss:$8 sps:$4 sm:$0xff] (!%p341_p2)   ;;  %v5429_v21 = vld [vmem:[%s8042_s1 + $0x854] ss:$8 sps:$4 sm:$0xff] (!%p341_p2)   ;;  %v5431_v22 = vld [vmem:[%s8042_s1 + $0x50] ss:$8 sps:$4 sm:$0xff] (!%p341_p2)  }
   0xd   : > { %3899 = vmatprep.subr.bf16.mxu0 %v5411_v9  ;;  %v5432_v23 = vld [vmem:[%s8042_s1 + $0x850] ss:$8 sps:$4 sm:$0xff]   ;;  %v5433_v24 = vld [vmem:[%s8042_s1 + $0x64] ss:$8 sps:$4 sm:$0xff]   ;;  %v5437_v26 = vld [vmem:[%s8042_s1 + $0x60] ss:$8 sps:$4 sm:$0xff]  }
   0xe   : > { %v5435_v25 = vld [vmem:[%s8042_s1 + $0x864] ss:$8 sps:$4 sm:$0xff]   ;;  %v5438_v27 = vld [vmem:[%s8042_s1 + $0x860] ss:$8 sps:$4 sm:$0xff]   ;;  %v5439_v28 = vld [vmem:[%s8042_s1 + $0x74] ss:$8 sps:$4 sm:$0xff]  }
   0xf   : > { %3572 = vmatpush1.bf16.msra.mxu1 %v5413_v10  ;;  %v5441_v29 = vld [vmem:[%s8042_s1 + $0x874] ss:$8 sps:$4 sm:$0xff]   ;;  %v5443_v30 = vld [vmem:[%s8042_s1 + $0x70] ss:$8 sps:$4 sm:$0xff]   ;;  %v5445_v32 = vld [vmem:[%s8042_s1 + $0x84] ss:$8 sps:$4 sm:$0xff]  }
  0x10   : > { %3900 = vmatpush1.bf16.msra.mxu0 %v5414_v11  ;;  %3573 = vmatprep.subr.bf16.mxu1 %v5415_v12  ;;  %v5444_v31 = vld [vmem:[%s8042_s1 + $0x870] ss:$8 sps:$4 sm:$0xff]   ;;  %v5447_v33 = vld [vmem:[%s8042_s1 + $0x884] ss:$8 sps:$4 sm:$0xff]   ;;  %v5449_v34 = vld [vmem:[%s8042_s1 + $0x80] ss:$8 sps:$4 sm:$0xff]  }
  0x11   : > { %3901 = vmatprep.subr.bf16.mxu0 %v5417_v13  ;;  %v5450_v35 = vld [vmem:[%s8042_s1 + $0x880] ss:$8 sps:$4 sm:$0xff]   ;;  %v5451_v36 = vld [vmem:[%s8042_s1 + $0x94] ss:$8 sps:$4 sm:$0xff]   ;;  %s8054_s18 = smov (!%p384_p3, %s4746_s18), 1  ;;  %vm4240_vm0 = vcmask 1040384  }
  0x12   : > { %v5453_v37 = vld [vmem:[%s8042_s1 + $0x894] ss:$8 sps:$4 sm:$0xff]   ;;  %v5455_v38 = vld [vmem:[%s8042_s1 + $0x90] ss:$8 sps:$4 sm:$0xff]   ;;  %v5457_v40 = vld [vmem:[%s8042_s1 + $0xa4] ss:$8 sps:$4 sm:$0xff]  }
  0x13   : > { %3574 = vmatpush1.bf16.msra.mxu1 %v5419_v14  ;;  %v5456_v39 = vld [vmem:[%s8042_s1 + $0x890] ss:$8 sps:$4 sm:$0xff]   ;;  %s5295_s14 = sshll.u32 %s8054_s18, 7  ;;  %v5459_v41 = vld [vmem:[%s8042_s1 + $0x8a4] ss:$8 sps:$4 sm:$0xff]   ;;  %vm4241_vm1 = vcmask 1041408  }
  0x14   : > { %3902 = vmatpush1.bf16.msra.mxu0 %v5420_v15  ;;  %3575 = vmatprep.subr.bf16.mxu1 %v5421_v16  ;;  %v5461_v42 = vld [vmem:[%s8042_s1 + $0xa0] ss:$8 sps:$4 sm:$0xff]   ;;  %s6428_s25 = scalar_lea.vmem %s8041_s0, %s5295_s14  ;;  %v5463_v44 = vld [vmem:[%s8042_s1 + $0xb4] ss:$8 sps:$4 sm:$0xff]   ;;  %v5467_v47 = vld [vmem:[%s8042_s1 + $0xb0] ss:$8 sps:$4 sm:$0xff]  }
  0x15   : > { %3903 = vmatprep.subr.bf16.mxu0 %v5423_v17  ;;  %v5462_v43 = vld [vmem:[%s8042_s1 + $0x8a0] ss:$8 sps:$4 sm:$0xff]   ;;  %v5465_v45 = vld [vmem:[%s8042_s1 + $0x8b4] ss:$8 sps:$4 sm:$0xff]   ;;  %v5468_v49 = vld [vmem:[%s8042_s1 + $0x8b0] ss:$8 sps:$4 sm:$0xff]  }
  0x16   : > { %v399_v46 = vld [vmem:[%s6428_s25] sm:$0x77]  ;;  %v5475_v58 = vld [vmem:[%s8042_s1 + $0xd4] ss:$8 sps:$4 sm:$0xff]   ;;  %v5479_v60 = vld [vmem:[%s8042_s1 + $0xd0] ss:$8 sps:$4 sm:$0xff]  }
  0x17   : > { %3576 = vmatpush1.bf16.msra.mxu1 %v5425_v18  ;;  %v431_v48 = vcombine.high %v399_v46, %v399_v46  ;;  %v407_v50 = vld [vmem:[%s6428_s25 + $0x40] sm:$0x77]  ;;  %v5477_v59 = vld [vmem:[%s8042_s1 + $0x8d4] ss:$8 sps:$4 sm:$0xff]   ;;  %v5480_v61 = vld [vmem:[%s8042_s1 + $0x8d0] ss:$8 sps:$4 sm:$0xff]   ;;  %v463_v8 = vpack.c.bf16 %v399_v46, %v399_v46 }
  0x18   : > { %3904 = vmatpush1.bf16.msra.mxu0 %v5426_v19  ;;  %3577 = vmatprep.subr.bf16.mxu1 %v5427_v20  ;;  %v5469_v51 = vld [vmem:[%s8042_s1 + $0xc4] ss:$8 sps:$4 sm:$0xff]   ;;  %v439_v54 = vcombine.high %v407_v50, %v407_v50  ;;  %v5473_v56 = vld [vmem:[%s8042_s1 + $0xc0] ss:$8 sps:$4 sm:$0xff]   ;;  %v5487_v2 = vld [vmem:[%s8042_s1 + $0xf4] ss:$8 sps:$4 sm:$0xff]   ;;  %v479_v9 = vpack.c.bf16 %v407_v50, %v407_v50 }
  0x19   : > { %3905 = vmatprep.subr.bf16.mxu0 %v5429_v21  ;;  %v5471_v52 = vld [vmem:[%s8042_s1 + $0x8c4] ss:$8 sps:$4 sm:$0xff]   ;;  %v464_v53 = vpack.c.bf16 %v431_v48, %v431_v48  ;;  %v5474_v57 = vld [vmem:[%s8042_s1 + $0x8c0] ss:$8 sps:$4 sm:$0xff]   ;;  %v5489_v3 = vld [vmem:[%s8042_s1 + $0x8f4] ss:$8 sps:$4 sm:$0xff]  }
  0x1a   : > { %v480_v55 = vpack.c.bf16 %v439_v54, %v439_v54  ;;  %v5481_v62 = vld [vmem:[%s8042_s1 + $0xe4] ss:$8 sps:$4 sm:$0xff]   ;;  %v5485_v0 = vld [vmem:[%s8042_s1 + $0xe0] ss:$8 sps:$4 sm:$0xff]   ;;  %v5491_v4 = vld [vmem:[%s8042_s1 + $0xf0] ss:$8 sps:$4 sm:$0xff]  }
  0x1b   : > { %3578 = vmatpush1.bf16.msra.mxu1 %v5431_v22  ;;  %3599 = vmatprep.mubr.bf16.mxu1 %v464_v53  ;;  %v5483_v63 = vld [vmem:[%s8042_s1 + $0x8e4] ss:$8 sps:$4 sm:$0xff]   ;;  %v5486_v1 = vld [vmem:[%s8042_s1 + $0x8e0] ss:$8 sps:$4 sm:$0xff]   ;;  %v5492_v5 = vld [vmem:[%s8042_s1 + $0x8f0] ss:$8 sps:$4 sm:$0xff]  }
  0x1c   : > { %3906 = vmatpush1.bf16.msra.mxu0 %v5432_v23  ;;  %3579 = vmatprep.subr.bf16.mxu1 %v5433_v24  ;;  %v5496_v6 = vld [vmem:[%s8042_s1 + $0x104] ss:$8 sps:$4 sm:$0xff]   ;;  %v5494_v10 = vld [vmem:[%s8042_s1 + $0x100] ss:$8 sps:$4 sm:$0xff]   ;;  %v5503_v12 = vld [vmem:[%s8042_s1 + $0x114] ss:$8 sps:$4 sm:$0xff]  }
  0x1d   : > { %3907 = vmatprep.subr.bf16.mxu0 %v5435_v25  ;;  %3927 = vmatprep.mubr.bf16.mxu0 %v480_v55  ;;  %v5500_v7 = vld [vmem:[%s8042_s1 + $0x904] ss:$8 sps:$4 sm:$0xff]   ;;  %v5498_v11 = vld [vmem:[%s8042_s1 + $0x900] ss:$8 sps:$4 sm:$0xff]   ;;  %v5506_v13 = vld [vmem:[%s8042_s1 + $0x914] ss:$8 sps:$4 sm:$0xff]  }
  0x1e   : > { %v5501_v14 = vld [vmem:[%s8042_s1 + $0x110] ss:$8 sps:$4 sm:$0xff]   ;;  %v5509_v16 = vld [vmem:[%s8042_s1 + $0x124] ss:$8 sps:$4 sm:$0xff]   ;;  %v5507_v18 = vld [vmem:[%s8042_s1 + $0x120] ss:$8 sps:$4 sm:$0xff]  }
  0x1f   : > { %3580 = vmatpush1.bf16.msra.mxu1 %v5437_v26  ;;  %v5504_v15 = vld [vmem:[%s8042_s1 + $0x910] ss:$8 sps:$4 sm:$0xff]   ;;  %v5512_v17 = vld [vmem:[%s8042_s1 + $0x924] ss:$8 sps:$4 sm:$0xff]   ;;  %v5510_v19 = vld [vmem:[%s8042_s1 + $0x920] ss:$8 sps:$4 sm:$0xff]  }
  0x20   : > { %3908 = vmatpush1.bf16.msra.mxu0 %v5438_v27  ;;  %3581 = vmatprep.subr.bf16.mxu1 %v5439_v28  ;;  %v5515_v20 = vld [vmem:[%s8042_s1 + $0x134] ss:$8 sps:$4 sm:$0xff]   ;;  %v5513_v22 = vld [vmem:[%s8042_s1 + $0x130] ss:$8 sps:$4 sm:$0xff]   ;;  %v5521_v24 = vld [vmem:[%s8042_s1 + $0x144] ss:$8 sps:$4 sm:$0xff]  }
  0x21   : > { %3909 = vmatprep.subr.bf16.mxu0 %v5441_v29  ;;  %v5518_v21 = vld [vmem:[%s8042_s1 + $0x934] ss:$8 sps:$4 sm:$0xff]   ;;  %v5516_v23 = vld [vmem:[%s8042_s1 + $0x930] ss:$8 sps:$4 sm:$0xff]   ;;  %v5524_v25 = vld [vmem:[%s8042_s1 + $0x944] ss:$8 sps:$4 sm:$0xff]  }
  0x22   : > { %v5519_v26 = vld [vmem:[%s8042_s1 + $0x140] ss:$8 sps:$4 sm:$0xff]   ;;  %v5527_v28 = vld [vmem:[%s8042_s1 + $0x154] ss:$8 sps:$4 sm:$0xff]   ;;  %v5545_v46 = vld [vmem:[%s8042_s1 + $0x184] ss:$8 sps:$4 sm:$0xff]  }
  0x23   : > { %3582 = vmatpush1.bf16.msra.mxu1 %v5443_v30  ;;  %v5522_v27 = vld [vmem:[%s8042_s1 + $0x940] ss:$8 sps:$4 sm:$0xff]   ;;  %v5530_v29 = vld [vmem:[%s8042_s1 + $0x954] ss:$8 sps:$4 sm:$0xff]   ;;  %v5525_v30 = vld [vmem:[%s8042_s1 + $0x150] ss:$8 sps:$4 sm:$0xff]  }
  0x24   : > { %3910 = vmatpush1.bf16.msra.mxu0 %v5444_v31  ;;  %3583 = vmatprep.subr.bf16.mxu1 %v5445_v32  ;;  %v5528_v31 = vld [vmem:[%s8042_s1 + $0x950] ss:$8 sps:$4 sm:$0xff]   ;;  %v5533_v32 = vld [vmem:[%s8042_s1 + $0x164] ss:$8 sps:$4 sm:$0xff]   ;;  %v5543_v48 = vld [vmem:[%s8042_s1 + $0x180] ss:$8 sps:$4 sm:$0xff]  }
  0x25   : > { %3911 = vmatprep.subr.bf16.mxu0 %v5447_v33  ;;  %v5536_v33 = vld [vmem:[%s8042_s1 + $0x964] ss:$8 sps:$4 sm:$0xff]   ;;  %v5551_v50 = vld [vmem:[%s8042_s1 + $0x194] ss:$8 sps:$4 sm:$0xff]   ;;  %v5552_v53 = vld [vmem:[%s8042_s1 + $0x990] ss:$8 sps:$4 sm:$0xff]  }
  0x26   : > { %v5557_v54 = vld [vmem:[%s8042_s1 + $0x1a4] ss:$8 sps:$4 sm:$0xff]   ;;  %vm4236_vm2 = vcmask 23552   ;;  %vm4310_vm3 = vcmask 130048   ;;  %vm6217_vm4 = vmmov 0   ;;  %s5296_s29 = sshll.u32 %s8054_s18, 2 }
  0x27   : > { %3584 = vmatpush1.bf16.msra.mxu1 %v5449_v34  ;;  %v6571_v34 = vld [vmem:[%s6428_s25 + $0x8] sm:$0x77]  ;;  %s393_s13 = scalar_lea.vmem %s8051_s10, %s5296_s29  ;;  %s4755_s16 = sshll.u32 %s8054_s18, 3  ;;  %vm4658_vm5 = vcmask 128000  }
  0x28   : > { %3912 = vmatpush1.bf16.msra.mxu0 %v5450_v35  ;;  %3585 = vmatprep.subr.bf16.mxu1 %v5451_v36  ;;  %v5531_v35 = vld [vmem:[%s8042_s1 + $0x160] ss:$8 sps:$4 sm:$0xff]   ;;  %v5560_v55 = vld [vmem:[%s8042_s1 + $0x9a4] ss:$8 sps:$4 sm:$0xff]  }
  0x29   : > { %3913 = vmatprep.subr.bf16.mxu0 %v5453_v37  ;;  %v5534_v36 = vld [vmem:[%s8042_s1 + $0x960] ss:$8 sps:$4 sm:$0xff]   ;;  %v432_v37 = vcombine.high %v6571_v34, %v6571_v34 }
  0x2b   : > { %3586 = vmatpush1.bf16.msra.mxu1 %v5455_v38  ;;  %v6582_v38 = vld [vmem:[%s6428_s25 + $0x48] sm:$0x77] }
  0x2c   : > { %3914 = vmatpush1.bf16.msra.mxu0 %v5456_v39  ;;  %3587 = vmatprep.subr.bf16.mxu1 %v5457_v40  ;;  %v5539_v39 = vld [vmem:[%s8042_s1 + $0x174] ss:$8 sps:$4 sm:$0xff]   ;;  %v440_v40 = vcombine.high %v6582_v38, %v6582_v38 }
  0x2d   : > { %3915 = vmatprep.subr.bf16.mxu0 %v5459_v41  ;;  %v5542_v41 = vld [vmem:[%s8042_s1 + $0x974] ss:$8 sps:$4 sm:$0xff]  }
  0x2f   : > { %3588 = vmatpush1.bf16.msra.mxu1 %v5461_v42  ;;  %v466_v42 = vpack.c.bf16 %v432_v37, %v432_v37  ;;  %v5614_v37 = vld [vmem:[%s8042_s1 + $0xa30] ss:$8 sps:$4 sm:$0xff]  }
  0x30   : > { %3916 = vmatpush1.bf16.msra.mxu0 %v5462_v43  ;;  %3589 = vmatprep.subr.bf16.mxu1 %v5463_v44  ;;  %v482_v43 = vpack.c.bf16 %v440_v40, %v440_v40  ;;  %v5537_v44 = vld [vmem:[%s8042_s1 + $0x170] ss:$8 sps:$4 sm:$0xff]   ;;  %v5617_v40 = vld [vmem:[%s8042_s1 + $0x240] ss:$8 sps:$4 sm:$0xff]  }
  0x31   : > { %3917 = vmatprep.subr.bf16.mxu0 %v5465_v45  ;;  %v5540_v45 = vld [vmem:[%s8042_s1 + $0x970] ss:$8 sps:$4 sm:$0xff]  }
  0x33   : > { %3590 = vmatpush1.bf16.msra.mxu1 %v5467_v47  ;;  %v5548_v47 = vld [vmem:[%s8042_s1 + $0x984] ss:$8 sps:$4 sm:$0xff]  }
  0x34   : > { %3918 = vmatpush1.bf16.msra.mxu0 %v5468_v49  ;;  %3591 = vmatprep.subr.bf16.mxu1 %v5469_v51  ;;  %v5546_v49 = vld [vmem:[%s8042_s1 + $0x980] ss:$8 sps:$4 sm:$0xff]   ;;  %v5554_v51 = vld [vmem:[%s8042_s1 + $0x994] ss:$8 sps:$4 sm:$0xff]  }
  0x35   : > { %3919 = vmatprep.subr.bf16.mxu0 %v5471_v52  ;;  %v5549_v52 = vld [vmem:[%s8042_s1 + $0x190] ss:$8 sps:$4 sm:$0xff]  }
  0x37   : > { %3592 = vmatpush1.bf16.msra.mxu1 %v5473_v56  ;;  %v5555_v56 = vld [vmem:[%s8042_s1 + $0x1a0] ss:$8 sps:$4 sm:$0xff]  }
  0x38   : > { %3920 = vmatpush1.bf16.msra.mxu0 %v5474_v57  ;;  %3593 = vmatprep.subr.bf16.mxu1 %v5475_v58  ;;  %v5558_v57 = vld [vmem:[%s8042_s1 + $0x9a0] ss:$8 sps:$4 sm:$0xff]   ;;  %v5563_v58 = vld [vmem:[%s8042_s1 + $0x1b4] ss:$8 sps:$4 sm:$0xff]  }
  0x39   : > { %3921 = vmatprep.subr.bf16.mxu0 %v5477_v59  ;;  %v5566_v59 = vld [vmem:[%s8042_s1 + $0x9b4] ss:$8 sps:$4 sm:$0xff]  }
  0x3b   : > { %3594 = vmatpush1.bf16.msra.mxu1 %v5479_v60  ;;  %v5561_v60 = vld [vmem:[%s8042_s1 + $0x1b0] ss:$8 sps:$4 sm:$0xff]  }
  0x3c   : > { %3922 = vmatpush1.bf16.msra.mxu0 %v5480_v61  ;;  %3595 = vmatprep.subr.bf16.mxu1 %v5481_v62  ;;  %v5564_v61 = vld [vmem:[%s8042_s1 + $0x9b0] ss:$8 sps:$4 sm:$0xff]   ;;  %v5569_v62 = vld [vmem:[%s8042_s1 + $0x1c4] ss:$8 sps:$4 sm:$0xff]  }
  0x3d   : > { %3923 = vmatprep.subr.bf16.mxu0 %v5483_v63  ;;  %v5572_v63 = vld [vmem:[%s8042_s1 + $0x9c4] ss:$8 sps:$4 sm:$0xff]  }
  0x3f   : > { %3596 = vmatpush1.bf16.msra.mxu1 %v5485_v0  ;;  %v5567_v0 = vld [vmem:[%s8042_s1 + $0x1c0] ss:$8 sps:$4 sm:$0xff]  }
  0x40   : > { %3924 = vmatpush1.bf16.msra.mxu0 %v5486_v1  ;;  %3597 = vmatprep.subr.bf16.mxu1 %v5487_v2  ;;  %v5570_v1 = vld [vmem:[%s8042_s1 + $0x9c0] ss:$8 sps:$4 sm:$0xff]   ;;  %v5575_v2 = vld [vmem:[%s8042_s1 + $0x1d4] ss:$8 sps:$4 sm:$0xff]  }
  0x41   : > { %3925 = vmatprep.subr.bf16.mxu0 %v5489_v3  ;;  %v5578_v3 = vld [vmem:[%s8042_s1 + $0x9d4] ss:$8 sps:$4 sm:$0xff]  }
  0x43   : > { %3598 = vmatpush1.bf16.msra.mxu1 %v5491_v4  ;;  %v5573_v4 = vld [vmem:[%s8042_s1 + $0x1d0] ss:$8 sps:$4 sm:$0xff]  }
  0x44   : > { %3926 = vmatpush1.bf16.msra.mxu0 %v5492_v5  ;;  %3608 = vmatprep.subr.bf16.mxu1 %v5496_v6  ;;  %v5576_v5 = vld [vmem:[%s8042_s1 + $0x9d0] ss:$8 sps:$4 sm:$0xff]   ;;  %v5581_v6 = vld [vmem:[%s8042_s1 + $0x1e4] ss:$8 sps:$4 sm:$0xff]  }
  0x45   : > { %3936 = vmatprep.subr.bf16.mxu0 %v5500_v7  ;;  %v5584_v7 = vld [vmem:[%s8042_s1 + $0x9e4] ss:$8 sps:$4 sm:$0xff]  }
  0x46   : > { %3600 = vmatmul.mubr.bf16.vlgmr.msra.gmra.mrb[0].mxu1 %v463_v8  ;;  %v5579_v8 = vld [vmem:[%s8042_s1 + $0x1e0] ss:$8 sps:$4 sm:$0xff]  }
  0x47   : > { %3928 = vmatmul.mubr.bf16.vlgmr.msra.gmra.mrb[0].mxu0 %v479_v9  ;;  %3609 = vmatpush1.bf16.msra.mxu1 %v5494_v10  ;;  %v5582_v9 = vld [vmem:[%s8042_s1 + $0x9e0] ss:$8 sps:$4 sm:$0xff]   ;;  %v5587_v10 = vld [vmem:[%s8042_s1 + $0x1f4] ss:$8 sps:$4 sm:$0xff]  }
  0x48   : > { %3937 = vmatpush1.bf16.msra.mxu0 %v5498_v11  ;;  %3610 = vmatprep.subr.bf16.mxu1 %v5503_v12  ;;  %v5590_v11 = vld [vmem:[%s8042_s1 + $0x9f4] ss:$8 sps:$4 sm:$0xff]   ;;  %v5585_v12 = vld [vmem:[%s8042_s1 + $0x1f0] ss:$8 sps:$4 sm:$0xff]  }
  0x49   : > { %3938 = vmatprep.subr.bf16.mxu0 %v5506_v13  ;;  %3640 = vmatprep.mubr.bf16.mxu1 %v466_v42  ;;  %v5588_v13 = vld [vmem:[%s8042_s1 + $0x9f0] ss:$8 sps:$4 sm:$0xff]   ;;  %v5625_v42 = vld [vmem:[%s8042_s1 + $0x254] ss:$8 sps:$4 sm:$0xff]  }
  0x4a   : > { %3968 = vmatprep.mubr.bf16.mxu0 %v482_v43  ;;  %v5628_v43 = vld [vmem:[%s8042_s1 + $0xa54] ss:$8 sps:$4 sm:$0xff]  }
  0x4b   : > { %3611 = vmatpush1.bf16.msra.mxu1 %v5501_v14  ;;  %v5594_v14 = vld [vmem:[%s8042_s1 + $0x204] ss:$8 sps:$4 sm:$0xff]  }
  0x4c   : > { %3939 = vmatpush1.bf16.msra.mxu0 %v5504_v15  ;;  %3612 = vmatprep.subr.bf16.mxu1 %v5509_v16  ;;  %v5598_v15 = vld [vmem:[%s8042_s1 + $0xa04] ss:$8 sps:$4 sm:$0xff]   ;;  %v465_v16 = vpack.c.bf16 %v6571_v34, %v6571_v34  ;;  %v5613_v34 = vld [vmem:[%s8042_s1 + $0x234] ss:$8 sps:$4 sm:$0xff]  }
  0x4d   : > { %3940 = vmatprep.subr.bf16.mxu0 %v5512_v17  ;;  %v5592_v17 = vld [vmem:[%s8042_s1 + $0x200] ss:$8 sps:$4 sm:$0xff]  }
  0x4f   : > { %3613 = vmatpush1.bf16.msra.mxu1 %v5507_v18  ;;  %v481_v18 = vpack.c.bf16 %v6582_v38, %v6582_v38  ;;  %v5619_v38 = vld [vmem:[%s8042_s1 + $0x244] ss:$8 sps:$4 sm:$0xff]  }
  0x50   : > { %3941 = vmatpush1.bf16.msra.mxu0 %v5510_v19  ;;  %3614 = vmatprep.subr.bf16.mxu1 %v5515_v20  ;;  %v5596_v19 = vld [vmem:[%s8042_s1 + $0xa00] ss:$8 sps:$4 sm:$0xff]   ;;  %v5601_v20 = vld [vmem:[%s8042_s1 + $0x214] ss:$8 sps:$4 sm:$0xff]  }
  0x51   : > { %3942 = vmatprep.subr.bf16.mxu0 %v5518_v21  ;;  %v5604_v21 = vld [vmem:[%s8042_s1 + $0xa14] ss:$8 sps:$4 sm:$0xff]  }
  0x53   : > { %3615 = vmatpush1.bf16.msra.mxu1 %v5513_v22  ;;  %v6717_v22 = vld [vmem:[%s6428_s25 + $0x10] sm:$0x77] }
  0x54   : > { %3943 = vmatpush1.bf16.msra.mxu0 %v5516_v23  ;;  %3616 = vmatprep.subr.bf16.mxu1 %v5521_v24  ;;  %v433_v23 = vcombine.high %v6717_v22, %v6717_v22  ;;  %v6722_v24 = vld [vmem:[%s6428_s25 + $0x50] sm:$0x77] }
  0x55   : > { %3944 = vmatprep.subr.bf16.mxu0 %v5524_v25  ;;  %v5599_v25 = vld [vmem:[%s8042_s1 + $0x210] ss:$8 sps:$4 sm:$0xff]  }
  0x57   : > { %3617 = vmatpush1.bf16.msra.mxu1 %v5519_v26  ;;  %v5602_v26 = vld [vmem:[%s8042_s1 + $0xa10] ss:$8 sps:$4 sm:$0xff]  }
  0x58   : > { %3945 = vmatpush1.bf16.msra.mxu0 %v5522_v27  ;;  %3618 = vmatprep.subr.bf16.mxu1 %v5527_v28  ;;  %v468_v27 = vpack.c.bf16 %v433_v23, %v433_v23  ;;  %v441_v28 = vcombine.high %v6722_v24, %v6722_v24  ;;  %v6901_v23 = vld [vmem:[%s6428_s25 + $0x18] sm:$0x77] }
  0x59   : > { %3946 = vmatprep.subr.bf16.mxu0 %v5530_v29  ;;  %v5607_v29 = vld [vmem:[%s8042_s1 + $0x224] ss:$8 sps:$4 sm:$0xff]  }
  0x5b   : > { %3619 = vmatpush1.bf16.msra.mxu1 %v5525_v30  ;;  %v5610_v30 = vld [vmem:[%s8042_s1 + $0xa24] ss:$8 sps:$4 sm:$0xff]  }
  0x5c   : > { %3947 = vmatpush1.bf16.msra.mxu0 %v5528_v31  ;;  %3620 = vmatprep.subr.bf16.mxu1 %v5533_v32  ;;  %v484_v31 = vpack.c.bf16 %v441_v28, %v441_v28  ;;  %v5605_v32 = vld [vmem:[%s8042_s1 + $0x220] ss:$8 sps:$4 sm:$0xff]   ;;  %v434_v28 = vcombine.high %v6901_v23, %v6901_v23 }
  0x5d   : > { %3948 = vmatprep.subr.bf16.mxu0 %v5536_v33  ;;  %v5608_v33 = vld [vmem:[%s8042_s1 + $0xa20] ss:$8 sps:$4 sm:$0xff]  }
  0x5f   : > { %3621 = vmatpush1.bf16.msra.mxu1 %v5531_v35  ;;  %v5616_v35 = vld [vmem:[%s8042_s1 + $0xa34] ss:$8 sps:$4 sm:$0xff]  }
  0x60   : > { %3949 = vmatpush1.bf16.msra.mxu0 %v5534_v36  ;;  %3622 = vmatprep.subr.bf16.mxu1 %v5539_v39  ;;  %v5611_v36 = vld [vmem:[%s8042_s1 + $0x230] ss:$8 sps:$4 sm:$0xff]   ;;  %v5622_v39 = vld [vmem:[%s8042_s1 + $0xa44] ss:$8 sps:$4 sm:$0xff]  }
  0x61   : > { %3950 = vmatprep.subr.bf16.mxu0 %v5542_v41  ;;  %v5620_v41 = vld [vmem:[%s8042_s1 + $0xa40] ss:$8 sps:$4 sm:$0xff]  }
  0x63   : > { %3623 = vmatpush1.bf16.msra.mxu1 %v5537_v44  ;;  %v5623_v44 = vld [vmem:[%s8042_s1 + $0x250] ss:$8 sps:$4 sm:$0xff]  }
  0x64   : > { %3951 = vmatpush1.bf16.msra.mxu0 %v5540_v45  ;;  %3624 = vmatprep.subr.bf16.mxu1 %v5545_v46  ;;  %v5626_v45 = vld [vmem:[%s8042_s1 + $0xa50] ss:$8 sps:$4 sm:$0xff]   ;;  %v5631_v46 = vld [vmem:[%s8042_s1 + $0x264] ss:$8 sps:$4 sm:$0xff]  }
  0x65   : > { %3952 = vmatprep.subr.bf16.mxu0 %v5548_v47  ;;  %v5634_v47 = vld [vmem:[%s8042_s1 + $0xa64] ss:$8 sps:$4 sm:$0xff]  }
  0x67   : > { %3625 = vmatpush1.bf16.msra.mxu1 %v5543_v48  ;;  %v5629_v48 = vld [vmem:[%s8042_s1 + $0x260] ss:$8 sps:$4 sm:$0xff]  }
  0x68   : > { %3953 = vmatpush1.bf16.msra.mxu0 %v5546_v49  ;;  %3626 = vmatprep.subr.bf16.mxu1 %v5551_v50  ;;  %v5632_v49 = vld [vmem:[%s8042_s1 + $0xa60] ss:$8 sps:$4 sm:$0xff]   ;;  %v5637_v50 = vld [vmem:[%s8042_s1 + $0x274] ss:$8 sps:$4 sm:$0xff]  }
  0x69   : > { %3954 = vmatprep.subr.bf16.mxu0 %v5554_v51  ;;  %v5640_v51 = vld [vmem:[%s8042_s1 + $0xa74] ss:$8 sps:$4 sm:$0xff]  }
  0x6b   : > { %3627 = vmatpush1.bf16.msra.mxu1 %v5549_v52  ;;  %v5635_v52 = vld [vmem:[%s8042_s1 + $0x270] ss:$8 sps:$4 sm:$0xff]  }
  0x6c   : > { %3955 = vmatpush1.bf16.msra.mxu0 %v5552_v53  ;;  %3628 = vmatprep.subr.bf16.mxu1 %v5557_v54  ;;  %v5638_v53 = vld [vmem:[%s8042_s1 + $0xa70] ss:$8 sps:$4 sm:$0xff]   ;;  %v5643_v54 = vld [vmem:[%s8042_s1 + $0x284] ss:$8 sps:$4 sm:$0xff]  }
  0x6d   : > { %3956 = vmatprep.subr.bf16.mxu0 %v5560_v55  ;;  %v5646_v55 = vld [vmem:[%s8042_s1 + $0xa84] ss:$8 sps:$4 sm:$0xff]  }
  0x6f   : > { %3629 = vmatpush1.bf16.msra.mxu1 %v5555_v56  ;;  %v5641_v56 = vld [vmem:[%s8042_s1 + $0x280] ss:$8 sps:$4 sm:$0xff]  }
  0x70   : > { %3957 = vmatpush1.bf16.msra.mxu0 %v5558_v57  ;;  %3630 = vmatprep.subr.bf16.mxu1 %v5563_v58  ;;  %v5644_v57 = vld [vmem:[%s8042_s1 + $0xa80] ss:$8 sps:$4 sm:$0xff]   ;;  %v5649_v58 = vld [vmem:[%s8042_s1 + $0x294] ss:$8 sps:$4 sm:$0xff]  }
  0x71   : > { %3958 = vmatprep.subr.bf16.mxu0 %v5566_v59  ;;  %v5652_v59 = vld [vmem:[%s8042_s1 + $0xa94] ss:$8 sps:$4 sm:$0xff]  }
  0x73   : > { %3631 = vmatpush1.bf16.msra.mxu1 %v5561_v60  ;;  %v5647_v60 = vld [vmem:[%s8042_s1 + $0x290] ss:$8 sps:$4 sm:$0xff]  }
  0x74   : > { %3959 = vmatpush1.bf16.msra.mxu0 %v5564_v61  ;;  %3632 = vmatprep.subr.bf16.mxu1 %v5569_v62  ;;  %v5650_v61 = vld [vmem:[%s8042_s1 + $0xa90] ss:$8 sps:$4 sm:$0xff]   ;;  %v5655_v62 = vld [vmem:[%s8042_s1 + $0x2a4] ss:$8 sps:$4 sm:$0xff]  }
  0x75   : > { %3960 = vmatprep.subr.bf16.mxu0 %v5572_v63  ;;  %v5658_v63 = vld [vmem:[%s8042_s1 + $0xaa4] ss:$8 sps:$4 sm:$0xff]  }
  0x77   : > { %3633 = vmatpush1.bf16.msra.mxu1 %v5567_v0  ;;  %v5653_v0 = vld [vmem:[%s8042_s1 + $0x2a0] ss:$8 sps:$4 sm:$0xff]  }
  0x78   : > { %3961 = vmatpush1.bf16.msra.mxu0 %v5570_v1  ;;  %3634 = vmatprep.subr.bf16.mxu1 %v5575_v2  ;;  %v5656_v1 = vld [vmem:[%s8042_s1 + $0xaa0] ss:$8 sps:$4 sm:$0xff]   ;;  %v5661_v2 = vld [vmem:[%s8042_s1 + $0x2b4] ss:$8 sps:$4 sm:$0xff]  }
  0x79   : > { %3962 = vmatprep.subr.bf16.mxu0 %v5578_v3  ;;  %v5664_v3 = vld [vmem:[%s8042_s1 + $0xab4] ss:$8 sps:$4 sm:$0xff]  }
  0x7b   : > { %3635 = vmatpush1.bf16.msra.mxu1 %v5573_v4  ;;  %v5659_v4 = vld [vmem:[%s8042_s1 + $0x2b0] ss:$8 sps:$4 sm:$0xff]  }
  0x7c   : > { %3963 = vmatpush1.bf16.msra.mxu0 %v5576_v5  ;;  %3636 = vmatprep.subr.bf16.mxu1 %v5581_v6  ;;  %v5662_v5 = vld [vmem:[%s8042_s1 + $0xab0] ss:$8 sps:$4 sm:$0xff]   ;;  %v5667_v6 = vld [vmem:[%s8042_s1 + $0x2c4] ss:$8 sps:$4 sm:$0xff]  }
  0x7d   : > { %3964 = vmatprep.subr.bf16.mxu0 %v5584_v7  ;;  %v5670_v7 = vld [vmem:[%s8042_s1 + $0xac4] ss:$8 sps:$4 sm:$0xff]  }
  0x7f   : > { %3637 = vmatpush1.bf16.msra.mxu1 %v5579_v8  ;;  %v5665_v8 = vld [vmem:[%s8042_s1 + $0x2c0] ss:$8 sps:$4 sm:$0xff]  }
  0x80   : > { %3965 = vmatpush1.bf16.msra.mxu0 %v5582_v9  ;;  %3638 = vmatprep.subr.bf16.mxu1 %v5587_v10  ;;  %v5668_v9 = vld [vmem:[%s8042_s1 + $0xac0] ss:$8 sps:$4 sm:$0xff]   ;;  %v5673_v10 = vld [vmem:[%s8042_s1 + $0x2d4] ss:$8 sps:$4 sm:$0xff]  }
  0x81   : > { %3966 = vmatprep.subr.bf16.mxu0 %v5590_v11  ;;  %v5676_v11 = vld [vmem:[%s8042_s1 + $0xad4] ss:$8 sps:$4 sm:$0xff]  }
  0x83   : > { %3639 = vmatpush1.bf16.msra.mxu1 %v5585_v12  ;;  %v5671_v12 = vld [vmem:[%s8042_s1 + $0x2d0] ss:$8 sps:$4 sm:$0xff]  }
  0x84   : > { %3967 = vmatpush1.bf16.msra.mxu0 %v5588_v13  ;;  %3649 = vmatprep.subr.bf16.mxu1 %v5594_v14  ;;  %v5674_v13 = vld [vmem:[%s8042_s1 + $0xad0] ss:$8 sps:$4 sm:$0xff]   ;;  %v5679_v14 = vld [vmem:[%s8042_s1 + $0x2e4] ss:$8 sps:$4 sm:$0xff]  }
  0x85   : > { %3977 = vmatprep.subr.bf16.mxu0 %v5598_v15  ;;  %v5682_v15 = vld [vmem:[%s8042_s1 + $0xae4] ss:$8 sps:$4 sm:$0xff]  }
  0x86   : > { %3641 = vmatmul.mubr.bf16.vlgmr.msra.gmra.mrb[0].mxu1 %v465_v16  ;;  %v5677_v16 = vld [vmem:[%s8042_s1 + $0x2e0] ss:$8 sps:$4 sm:$0xff]  }
  0x87   : > { %3969 = vmatmul.mubr.bf16.vlgmr.msra.gmra.mrb[0].mxu0 %v481_v18  ;;  %3650 = vmatpush1.bf16.msra.mxu1 %v5592_v17  ;;  %v5680_v17 = vld [vmem:[%s8042_s1 + $0xae0] ss:$8 sps:$4 sm:$0xff]   ;;  %v5685_v18 = vld [vmem:[%s8042_s1 + $0x2f4] ss:$8 sps:$4 sm:$0xff]  }
  0x88   : > { %3978 = vmatpush1.bf16.msra.mxu0 %v5596_v19  ;;  %3651 = vmatprep.subr.bf16.mxu1 %v5601_v20  ;;  %v5688_v19 = vld [vmem:[%s8042_s1 + $0xaf4] ss:$8 sps:$4 sm:$0xff]   ;;  %v5683_v20 = vld [vmem:[%s8042_s1 + $0x2f0] ss:$8 sps:$4 sm:$0xff]  }
  0x89   : > { %3979 = vmatprep.subr.bf16.mxu0 %v5604_v21  ;;  %3681 = vmatprep.mubr.bf16.mxu1 %v468_v27  ;;  %v5686_v21 = vld [vmem:[%s8042_s1 + $0xaf0] ss:$8 sps:$4 sm:$0xff]   ;;  %v5696_v27 = vld [vmem:[%s8042_s1 + $0xb04] ss:$8 sps:$4 sm:$0xff]  }
  0x8a   : > { %4009 = vmatprep.mubr.bf16.mxu0 %v484_v31  ;;  %v5690_v31 = vld [vmem:[%s8042_s1 + $0x300] ss:$8 sps:$4 sm:$0xff]  }
  0x8b   : > { %3652 = vmatpush1.bf16.msra.mxu1 %v5599_v25  ;;  %v6904_v25 = vld [vmem:[%s6428_s25 + $0x58] sm:$0x77] }
  0x8c   : > { %3980 = vmatpush1.bf16.msra.mxu0 %v5602_v26  ;;  %3653 = vmatprep.subr.bf16.mxu1 %v5607_v29  ;;  %v5692_v26 = vld [vmem:[%s8042_s1 + $0x304] ss:$8 sps:$4 sm:$0xff]   ;;  %v442_v29 = vcombine.high %v6904_v25, %v6904_v25 }
  0x8d   : > { %3981 = vmatprep.subr.bf16.mxu0 %v5610_v30  ;;  %v467_v30 = vpack.c.bf16 %v6717_v22, %v6717_v22  ;;  %v5702_v22 = vld [vmem:[%s8042_s1 + $0xb14] ss:$8 sps:$4 sm:$0xff]  }
  0x8f   : > { %3654 = vmatpush1.bf16.msra.mxu1 %v5605_v32  ;;  %v483_v32 = vpack.c.bf16 %v6722_v24, %v6722_v24  ;;  %v5697_v24 = vld [vmem:[%s8042_s1 + $0x310] ss:$8 sps:$4 sm:$0xff]  }
  0x90   : > { %3982 = vmatpush1.bf16.msra.mxu0 %v5608_v33  ;;  %3655 = vmatprep.subr.bf16.mxu1 %v5613_v34  ;;  %v5694_v33 = vld [vmem:[%s8042_s1 + $0xb00] ss:$8 sps:$4 sm:$0xff]   ;;  %v5699_v34 = vld [vmem:[%s8042_s1 + $0x314] ss:$8 sps:$4 sm:$0xff]  }
  0x91   : > { %3983 = vmatprep.subr.bf16.mxu0 %v5616_v35  ;;  %v470_v35 = vpack.c.bf16 %v434_v28, %v434_v28  ;;  %v5775_v28 = vld [vmem:[%s8042_s1 + $0x3e0] ss:$8 sps:$4 sm:$0xff]  }
  0x93   : > { %3656 = vmatpush1.bf16.msra.mxu1 %v5611_v36  ;;  %v486_v36 = vpack.c.bf16 %v442_v29, %v442_v29  ;;  %v5778_v29 = vld [vmem:[%s8042_s1 + $0xbe0] ss:$8 sps:$4 sm:$0xff]  }
  0x94   : > { %3984 = vmatpush1.bf16.msra.mxu0 %v5614_v37  ;;  %3657 = vmatprep.subr.bf16.mxu1 %v5619_v38  ;;  %v5700_v37 = vld [vmem:[%s8042_s1 + $0xb10] ss:$8 sps:$4 sm:$0xff]   ;;  %v5705_v38 = vld [vmem:[%s8042_s1 + $0x324] ss:$8 sps:$4 sm:$0xff]  }
  0x95   : > { %3985 = vmatprep.subr.bf16.mxu0 %v5622_v39  ;;  %v5708_v39 = vld [vmem:[%s8042_s1 + $0xb24] ss:$8 sps:$4 sm:$0xff]  }
  0x97   : > { %3658 = vmatpush1.bf16.msra.mxu1 %v5617_v40  ;;  %v5703_v40 = vld [vmem:[%s8042_s1 + $0x320] ss:$8 sps:$4 sm:$0xff]  }
  0x98   : > { %3986 = vmatpush1.bf16.msra.mxu0 %v5620_v41  ;;  %3659 = vmatprep.subr.bf16.mxu1 %v5625_v42  ;;  %v5706_v41 = vld [vmem:[%s8042_s1 + $0xb20] ss:$8 sps:$4 sm:$0xff]   ;;  %v5711_v42 = vld [vmem:[%s8042_s1 + $0x334] ss:$8 sps:$4 sm:$0xff]  }
  0x99   : > { %3987 = vmatprep.subr.bf16.mxu0 %v5628_v43  ;;  %v5714_v43 = vld [vmem:[%s8042_s1 + $0xb34] ss:$8 sps:$4 sm:$0xff]  }
  0x9b   : > { %3660 = vmatpush1.bf16.msra.mxu1 %v5623_v44  ;;  %v5709_v44 = vld [vmem:[%s8042_s1 + $0x330] ss:$8 sps:$4 sm:$0xff]  }
  0x9c   : > { %3988 = vmatpush1.bf16.msra.mxu0 %v5626_v45  ;;  %3661 = vmatprep.subr.bf16.mxu1 %v5631_v46  ;;  %v5712_v45 = vld [vmem:[%s8042_s1 + $0xb30] ss:$8 sps:$4 sm:$0xff]   ;;  %v5717_v46 = vld [vmem:[%s8042_s1 + $0x344] ss:$8 sps:$4 sm:$0xff]  }
  0x9d   : > { %3989 = vmatprep.subr.bf16.mxu0 %v5634_v47  ;;  %v5720_v47 = vld [vmem:[%s8042_s1 + $0xb44] ss:$8 sps:$4 sm:$0xff]  }
  0x9f   : > { %3662 = vmatpush1.bf16.msra.mxu1 %v5629_v48  ;;  %v5715_v48 = vld [vmem:[%s8042_s1 + $0x340] ss:$8 sps:$4 sm:$0xff]  }
  0xa0   : > { %3990 = vmatpush1.bf16.msra.mxu0 %v5632_v49  ;;  %3663 = vmatprep.subr.bf16.mxu1 %v5637_v50  ;;  %v5718_v49 = vld [vmem:[%s8042_s1 + $0xb40] ss:$8 sps:$4 sm:$0xff]   ;;  %v5723_v50 = vld [vmem:[%s8042_s1 + $0x354] ss:$8 sps:$4 sm:$0xff]  }
  0xa1   : > { %3991 = vmatprep.subr.bf16.mxu0 %v5640_v51  ;;  %v5726_v51 = vld [vmem:[%s8042_s1 + $0xb54] ss:$8 sps:$4 sm:$0xff]  }
  0xa3   : > { %3664 = vmatpush1.bf16.msra.mxu1 %v5635_v52  ;;  %v5721_v52 = vld [vmem:[%s8042_s1 + $0x350] ss:$8 sps:$4 sm:$0xff]  }
  0xa4   : > { %3992 = vmatpush1.bf16.msra.mxu0 %v5638_v53  ;;  %3665 = vmatprep.subr.bf16.mxu1 %v5643_v54  ;;  %v5724_v53 = vld [vmem:[%s8042_s1 + $0xb50] ss:$8 sps:$4 sm:$0xff]   ;;  %v5729_v54 = vld [vmem:[%s8042_s1 + $0x364] ss:$8 sps:$4 sm:$0xff]  }
  0xa5   : > { %3993 = vmatprep.subr.bf16.mxu0 %v5646_v55  ;;  %v5732_v55 = vld [vmem:[%s8042_s1 + $0xb64] ss:$8 sps:$4 sm:$0xff]  }
  0xa7   : > { %3666 = vmatpush1.bf16.msra.mxu1 %v5641_v56  ;;  %v5727_v56 = vld [vmem:[%s8042_s1 + $0x360] ss:$8 sps:$4 sm:$0xff]  }
  0xa8   : > { %3994 = vmatpush1.bf16.msra.mxu0 %v5644_v57  ;;  %3667 = vmatprep.subr.bf16.mxu1 %v5649_v58  ;;  %v5730_v57 = vld [vmem:[%s8042_s1 + $0xb60] ss:$8 sps:$4 sm:$0xff]   ;;  %v5735_v58 = vld [vmem:[%s8042_s1 + $0x374] ss:$8 sps:$4 sm:$0xff]  }
  0xa9   : > { %3995 = vmatprep.subr.bf16.mxu0 %v5652_v59  ;;  %v5738_v59 = vld [vmem:[%s8042_s1 + $0xb74] ss:$8 sps:$4 sm:$0xff]  }
  0xab   : > { %3668 = vmatpush1.bf16.msra.mxu1 %v5647_v60  ;;  %v5733_v60 = vld [vmem:[%s8042_s1 + $0x370] ss:$8 sps:$4 sm:$0xff]  }
  0xac   : > { %3996 = vmatpush1.bf16.msra.mxu0 %v5650_v61  ;;  %3669 = vmatprep.subr.bf16.mxu1 %v5655_v62  ;;  %v5736_v61 = vld [vmem:[%s8042_s1 + $0xb70] ss:$8 sps:$4 sm:$0xff]   ;;  %v5741_v62 = vld [vmem:[%s8042_s1 + $0x384] ss:$8 sps:$4 sm:$0xff]  }
  0xad   : > { %3997 = vmatprep.subr.bf16.mxu0 %v5658_v63  ;;  %v5744_v63 = vld [vmem:[%s8042_s1 + $0xb84] ss:$8 sps:$4 sm:$0xff]  }
  0xaf   : > { %3670 = vmatpush1.bf16.msra.mxu1 %v5653_v0  ;;  %v5739_v0 = vld [vmem:[%s8042_s1 + $0x380] ss:$8 sps:$4 sm:$0xff]  }
  0xb0   : > { %3998 = vmatpush1.bf16.msra.mxu0 %v5656_v1  ;;  %3671 = vmatprep.subr.bf16.mxu1 %v5661_v2  ;;  %v5742_v1 = vld [vmem:[%s8042_s1 + $0xb80] ss:$8 sps:$4 sm:$0xff]   ;;  %v5747_v2 = vld [vmem:[%s8042_s1 + $0x394] ss:$8 sps:$4 sm:$0xff]  }
  0xb1   : > { %3999 = vmatprep.subr.bf16.mxu0 %v5664_v3  ;;  %v5750_v3 = vld [vmem:[%s8042_s1 + $0xb94] ss:$8 sps:$4 sm:$0xff]  }
  0xb3   : > { %3672 = vmatpush1.bf16.msra.mxu1 %v5659_v4  ;;  %v5745_v4 = vld [vmem:[%s8042_s1 + $0x390] ss:$8 sps:$4 sm:$0xff]  }
  0xb4   : > { %4000 = vmatpush1.bf16.msra.mxu0 %v5662_v5  ;;  %3673 = vmatprep.subr.bf16.mxu1 %v5667_v6  ;;  %v5748_v5 = vld [vmem:[%s8042_s1 + $0xb90] ss:$8 sps:$4 sm:$0xff]   ;;  %v5753_v6 = vld [vmem:[%s8042_s1 + $0x3a4] ss:$8 sps:$4 sm:$0xff]  }
  0xb5   : > { %4001 = vmatprep.subr.bf16.mxu0 %v5670_v7  ;;  %v5756_v7 = vld [vmem:[%s8042_s1 + $0xba4] ss:$8 sps:$4 sm:$0xff]  }
  0xb7   : > { %3674 = vmatpush1.bf16.msra.mxu1 %v5665_v8  ;;  %v5751_v8 = vld [vmem:[%s8042_s1 + $0x3a0] ss:$8 sps:$4 sm:$0xff]  }
  0xb8   : > { %4002 = vmatpush1.bf16.msra.mxu0 %v5668_v9  ;;  %3675 = vmatprep.subr.bf16.mxu1 %v5673_v10  ;;  %v5754_v9 = vld [vmem:[%s8042_s1 + $0xba0] ss:$8 sps:$4 sm:$0xff]   ;;  %v5759_v10 = vld [vmem:[%s8042_s1 + $0x3b4] ss:$8 sps:$4 sm:$0xff]  }
  0xb9   : > { %4003 = vmatprep.subr.bf16.mxu0 %v5676_v11  ;;  %v5762_v11 = vld [vmem:[%s8042_s1 + $0xbb4] ss:$8 sps:$4 sm:$0xff]  }
  0xbb   : > { %3676 = vmatpush1.bf16.msra.mxu1 %v5671_v12  ;;  %v5757_v12 = vld [vmem:[%s8042_s1 + $0x3b0] ss:$8 sps:$4 sm:$0xff]  }
  0xbc   : > { %4004 = vmatpush1.bf16.msra.mxu0 %v5674_v13  ;;  %3677 = vmatprep.subr.bf16.mxu1 %v5679_v14  ;;  %v5760_v13 = vld [vmem:[%s8042_s1 + $0xbb0] ss:$8 sps:$4 sm:$0xff]   ;;  %v5765_v14 = vld [vmem:[%s8042_s1 + $0x3c4] ss:$8 sps:$4 sm:$0xff]  }
  0xbd   : > { %4005 = vmatprep.subr.bf16.mxu0 %v5682_v15  ;;  %v5768_v15 = vld [vmem:[%s8042_s1 + $0xbc4] ss:$8 sps:$4 sm:$0xff]  }
  0xbf   : > { %3678 = vmatpush1.bf16.msra.mxu1 %v5677_v16  ;;  %v5763_v16 = vld [vmem:[%s8042_s1 + $0x3c0] ss:$8 sps:$4 sm:$0xff]  }
  0xc0   : > { %4006 = vmatpush1.bf16.msra.mxu0 %v5680_v17  ;;  %3679 = vmatprep.subr.bf16.mxu1 %v5685_v18  ;;  %v5766_v17 = vld [vmem:[%s8042_s1 + $0xbc0] ss:$8 sps:$4 sm:$0xff]   ;;  %v5771_v18 = vld [vmem:[%s8042_s1 + $0x3d4] ss:$8 sps:$4 sm:$0xff]  }
  0xc1   : > { %4007 = vmatprep.subr.bf16.mxu0 %v5688_v19  ;;  %v5774_v19 = vld [vmem:[%s8042_s1 + $0xbd4] ss:$8 sps:$4 sm:$0xff]  }
  0xc3   : > { %3680 = vmatpush1.bf16.msra.mxu1 %v5683_v20  ;;  %v5769_v20 = vld [vmem:[%s8042_s1 + $0x3d0] ss:$8 sps:$4 sm:$0xff]  }
  0xc4   : > { %4008 = vmatpush1.bf16.msra.mxu0 %v5686_v21  ;;  %3690 = vmatprep.subr.bf16.mxu1 %v5692_v26  ;;  %v5772_v21 = vld [vmem:[%s8042_s1 + $0xbd0] ss:$8 sps:$4 sm:$0xff]   ;;  %v5777_v26 = vld [vmem:[%s8042_s1 + $0x3e4] ss:$8 sps:$4 sm:$0xff]  }
  0xc5   : > { %4018 = vmatprep.subr.bf16.mxu0 %v5696_v27  ;;  %v5780_v27 = vld [vmem:[%s8042_s1 + $0xbe4] ss:$8 sps:$4 sm:$0xff]  }
  0xc6   : > { %3682 = vmatmul.mubr.bf16.vlgmr.msra.gmra.mrb[0].mxu1 %v467_v30  ;;  %v5783_v30 = vld [vmem:[%s8042_s1 + $0x3f4] ss:$8 sps:$4 sm:$0xff]  }
  0xc7   : > { %4010 = vmatmul.mubr.bf16.vlgmr.msra.gmra.mrb[0].mxu0 %v483_v32  ;;  %3691 = vmatpush1.bf16.msra.mxu1 %v5690_v31  ;;  %v5786_v31 = vld [vmem:[%s8042_s1 + $0xbf4] ss:$8 sps:$4 sm:$0xff]   ;;  %v7101_v32 = vld [vmem:[%s6428_s25 + $0x20] sm:$0x77] }
  0xc8   : > { %4019 = vmatpush1.bf16.msra.mxu0 %v5694_v33  ;;  %3692 = vmatprep.subr.bf16.mxu1 %v5699_v34  ;;  %v7104_v33 = vld [vmem:[%s6428_s25 + $0x60] sm:$0x77]  ;;  %v5781_v34 = vld [vmem:[%s8042_s1 + $0x3f0] ss:$8 sps:$4 sm:$0xff]  }
  0xc9   : > { %4020 = vmatprep.subr.bf16.mxu0 %v5702_v22  ;;  %3722 = vmatprep.mubr.bf16.mxu1 %v470_v35  ;;  %v5784_v22 = vld [vmem:[%s8042_s1 + $0xbf0] ss:$8 sps:$4 sm:$0xff]   ;;  %v5790_v35 = vld [vmem:[%s8042_s1 + $0x404] ss:$8 sps:$4 sm:$0xff]  }
  0xca   : > { %4050 = vmatprep.mubr.bf16.mxu0 %v486_v36  ;;  %v5794_v36 = vld [vmem:[%s8042_s1 + $0xc04] ss:$8 sps:$4 sm:$0xff]  }
  0xcb   : > { %3693 = vmatpush1.bf16.msra.mxu1 %v5697_v24  ;;  %v435_v24 = vcombine.high %v7101_v32, %v7101_v32 }
  0xcc   : > { %4021 = vmatpush1.bf16.msra.mxu0 %v5700_v37  ;;  %3694 = vmatprep.subr.bf16.mxu1 %v5705_v38  ;;  %v443_v37 = vcombine.high %v7104_v33, %v7104_v33  ;;  %v469_v38 = vpack.c.bf16 %v6901_v23, %v6901_v23  ;;  %v5800_v23 = vld [vmem:[%s8042_s1 + $0xc14] ss:$8 sps:$4 sm:$0xff]  }
  0xcd   : > { %4022 = vmatprep.subr.bf16.mxu0 %v5708_v39  ;;  %v485_v39 = vpack.c.bf16 %v6904_v25, %v6904_v25  ;;  %v472_v25 = vpack.c.bf16 %v435_v24, %v435_v24  ;;  %v5873_v24 = vld [vmem:[%s8042_s1 + $0x4e0] ss:$8 sps:$4 sm:$0xff]  }
  0xcf   : > { %3695 = vmatpush1.bf16.msra.mxu1 %v5703_v40  ;;  %v5788_v40 = vld [vmem:[%s8042_s1 + $0x400] ss:$8 sps:$4 sm:$0xff]  }
  0xd0   : > { %4023 = vmatpush1.bf16.msra.mxu0 %v5706_v41  ;;  %3696 = vmatprep.subr.bf16.mxu1 %v5711_v42  ;;  %v5792_v41 = vld [vmem:[%s8042_s1 + $0xc00] ss:$8 sps:$4 sm:$0xff]   ;;  %v5797_v42 = vld [vmem:[%s8042_s1 + $0x414] ss:$8 sps:$4 sm:$0xff]  }
  0xd1   : > { %4024 = vmatprep.subr.bf16.mxu0 %v5714_v43  ;;  %v488_v43 = vpack.c.bf16 %v443_v37, %v443_v37  ;;  %v5876_v37 = vld [vmem:[%s8042_s1 + $0xce0] ss:$8 sps:$4 sm:$0xff]  }
  0xd3   : > { %3697 = vmatpush1.bf16.msra.mxu1 %v5709_v44  ;;  %v5795_v44 = vld [vmem:[%s8042_s1 + $0x410] ss:$8 sps:$4 sm:$0xff]  }
  0xd4   : > { %4025 = vmatpush1.bf16.msra.mxu0 %v5712_v45  ;;  %3698 = vmatprep.subr.bf16.mxu1 %v5717_v46  ;;  %v5798_v45 = vld [vmem:[%s8042_s1 + $0xc10] ss:$8 sps:$4 sm:$0xff]   ;;  %v5803_v46 = vld [vmem:[%s8042_s1 + $0x424] ss:$8 sps:$4 sm:$0xff]  }
  0xd5   : > { %4026 = vmatprep.subr.bf16.mxu0 %v5720_v47  ;;  %v5806_v47 = vld [vmem:[%s8042_s1 + $0xc24] ss:$8 sps:$4 sm:$0xff]  }
  0xd7   : > { %3699 = vmatpush1.bf16.msra.mxu1 %v5715_v48  ;;  %v5801_v48 = vld [vmem:[%s8042_s1 + $0x420] ss:$8 sps:$4 sm:$0xff]  }
  0xd8   : > { %4027 = vmatpush1.bf16.msra.mxu0 %v5718_v49  ;;  %3700 = vmatprep.subr.bf16.mxu1 %v5723_v50  ;;  %v5804_v49 = vld [vmem:[%s8042_s1 + $0xc20] ss:$8 sps:$4 sm:$0xff]   ;;  %v5809_v50 = vld [vmem:[%s8042_s1 + $0x434] ss:$8 sps:$4 sm:$0xff]  }
  0xd9   : > { %4028 = vmatprep.subr.bf16.mxu0 %v5726_v51  ;;  %v5812_v51 = vld [vmem:[%s8042_s1 + $0xc34] ss:$8 sps:$4 sm:$0xff]  }
  0xdb   : > { %3701 = vmatpush1.bf16.msra.mxu1 %v5721_v52  ;;  %v5807_v52 = vld [vmem:[%s8042_s1 + $0x430] ss:$8 sps:$4 sm:$0xff]  }
  0xdc   : > { %4029 = vmatpush1.bf16.msra.mxu0 %v5724_v53  ;;  %3702 = vmatprep.subr.bf16.mxu1 %v5729_v54  ;;  %v5810_v53 = vld [vmem:[%s8042_s1 + $0xc30] ss:$8 sps:$4 sm:$0xff]   ;;  %v5815_v54 = vld [vmem:[%s8042_s1 + $0x444] ss:$8 sps:$4 sm:$0xff]  }
  0xdd   : > { %4030 = vmatprep.subr.bf16.mxu0 %v5732_v55  ;;  %v5818_v55 = vld [vmem:[%s8042_s1 + $0xc44] ss:$8 sps:$4 sm:$0xff]  }
  0xdf   : > { %3703 = vmatpush1.bf16.msra.mxu1 %v5727_v56  ;;  %v5813_v56 = vld [vmem:[%s8042_s1 + $0x440] ss:$8 sps:$4 sm:$0xff]  }
  0xe0   : > { %4031 = vmatpush1.bf16.msra.mxu0 %v5730_v57  ;;  %3704 = vmatprep.subr.bf16.mxu1 %v5735_v58  ;;  %v5816_v57 = vld [vmem:[%s8042_s1 + $0xc40] ss:$8 sps:$4 sm:$0xff]   ;;  %v5821_v58 = vld [vmem:[%s8042_s1 + $0x454] ss:$8 sps:$4 sm:$0xff]  }
  0xe1   : > { %4032 = vmatprep.subr.bf16.mxu0 %v5738_v59  ;;  %v5824_v59 = vld [vmem:[%s8042_s1 + $0xc54] ss:$8 sps:$4 sm:$0xff]  }
  0xe3   : > { %3705 = vmatpush1.bf16.msra.mxu1 %v5733_v60  ;;  %v5819_v60 = vld [vmem:[%s8042_s1 + $0x450] ss:$8 sps:$4 sm:$0xff]  }
  0xe4   : > { %4033 = vmatpush1.bf16.msra.mxu0 %v5736_v61  ;;  %3706 = vmatprep.subr.bf16.mxu1 %v5741_v62  ;;  %v5822_v61 = vld [vmem:[%s8042_s1 + $0xc50] ss:$8 sps:$4 sm:$0xff]   ;;  %v5827_v62 = vld [vmem:[%s8042_s1 + $0x464] ss:$8 sps:$4 sm:$0xff]  }
  0xe5   : > { %4034 = vmatprep.subr.bf16.mxu0 %v5744_v63  ;;  %v5830_v63 = vld [vmem:[%s8042_s1 + $0xc64] ss:$8 sps:$4 sm:$0xff]  }
  0xe7   : > { %3707 = vmatpush1.bf16.msra.mxu1 %v5739_v0  ;;  %v5825_v0 = vld [vmem:[%s8042_s1 + $0x460] ss:$8 sps:$4 sm:$0xff]  }
  0xe8   : > { %4035 = vmatpush1.bf16.msra.mxu0 %v5742_v1  ;;  %3708 = vmatprep.subr.bf16.mxu1 %v5747_v2  ;;  %v5828_v1 = vld [vmem:[%s8042_s1 + $0xc60] ss:$8 sps:$4 sm:$0xff]   ;;  %v5833_v2 = vld [vmem:[%s8042_s1 + $0x474] ss:$8 sps:$4 sm:$0xff]  }
  0xe9   : > { %4036 = vmatprep.subr.bf16.mxu0 %v5750_v3  ;;  %v5836_v3 = vld [vmem:[%s8042_s1 + $0xc74] ss:$8 sps:$4 sm:$0xff]  }
  0xeb   : > { %3709 = vmatpush1.bf16.msra.mxu1 %v5745_v4  ;;  %v5831_v4 = vld [vmem:[%s8042_s1 + $0x470] ss:$8 sps:$4 sm:$0xff]  }
  0xec   : > { %4037 = vmatpush1.bf16.msra.mxu0 %v5748_v5  ;;  %3710 = vmatprep.subr.bf16.mxu1 %v5753_v6  ;;  %v5834_v5 = vld [vmem:[%s8042_s1 + $0xc70] ss:$8 sps:$4 sm:$0xff]   ;;  %v5839_v6 = vld [vmem:[%s8042_s1 + $0x484] ss:$8 sps:$4 sm:$0xff]  }
  0xed   : > { %4038 = vmatprep.subr.bf16.mxu0 %v5756_v7  ;;  %v5842_v7 = vld [vmem:[%s8042_s1 + $0xc84] ss:$8 sps:$4 sm:$0xff]  }
  0xef   : > { %3711 = vmatpush1.bf16.msra.mxu1 %v5751_v8  ;;  %v5837_v8 = vld [vmem:[%s8042_s1 + $0x480] ss:$8 sps:$4 sm:$0xff]  }
  0xf0   : > { %4039 = vmatpush1.bf16.msra.mxu0 %v5754_v9  ;;  %3712 = vmatprep.subr.bf16.mxu1 %v5759_v10  ;;  %v5840_v9 = vld [vmem:[%s8042_s1 + $0xc80] ss:$8 sps:$4 sm:$0xff]   ;;  %v5845_v10 = vld [vmem:[%s8042_s1 + $0x494] ss:$8 sps:$4 sm:$0xff]  }
  0xf1   : > { %4040 = vmatprep.subr.bf16.mxu0 %v5762_v11  ;;  %v5848_v11 = vld [vmem:[%s8042_s1 + $0xc94] ss:$8 sps:$4 sm:$0xff]  }
  0xf3   : > { %3713 = vmatpush1.bf16.msra.mxu1 %v5757_v12  ;;  %v5843_v12 = vld [vmem:[%s8042_s1 + $0x490] ss:$8 sps:$4 sm:$0xff]  }
  0xf4   : > { %4041 = vmatpush1.bf16.msra.mxu0 %v5760_v13  ;;  %3714 = vmatprep.subr.bf16.mxu1 %v5765_v14  ;;  %v5846_v13 = vld [vmem:[%s8042_s1 + $0xc90] ss:$8 sps:$4 sm:$0xff]   ;;  %v5851_v14 = vld [vmem:[%s8042_s1 + $0x4a4] ss:$8 sps:$4 sm:$0xff]  }
  0xf5   : > { %4042 = vmatprep.subr.bf16.mxu0 %v5768_v15  ;;  %v5854_v15 = vld [vmem:[%s8042_s1 + $0xca4] ss:$8 sps:$4 sm:$0xff]  }
  0xf7   : > { %3715 = vmatpush1.bf16.msra.mxu1 %v5763_v16  ;;  %v5849_v16 = vld [vmem:[%s8042_s1 + $0x4a0] ss:$8 sps:$4 sm:$0xff]  }
  0xf8   : > { %4043 = vmatpush1.bf16.msra.mxu0 %v5766_v17  ;;  %3716 = vmatprep.subr.bf16.mxu1 %v5771_v18  ;;  %v5852_v17 = vld [vmem:[%s8042_s1 + $0xca0] ss:$8 sps:$4 sm:$0xff]   ;;  %v5857_v18 = vld [vmem:[%s8042_s1 + $0x4b4] ss:$8 sps:$4 sm:$0xff]  }
  0xf9   : > { %4044 = vmatprep.subr.bf16.mxu0 %v5774_v19  ;;  %v5860_v19 = vld [vmem:[%s8042_s1 + $0xcb4] ss:$8 sps:$4 sm:$0xff]  }
  0xfb   : > { %3717 = vmatpush1.bf16.msra.mxu1 %v5769_v20  ;;  %v5855_v20 = vld [vmem:[%s8042_s1 + $0x4b0] ss:$8 sps:$4 sm:$0xff]  }
  0xfc   : > { %4045 = vmatpush1.bf16.msra.mxu0 %v5772_v21  ;;  %3718 = vmatprep.subr.bf16.mxu1 %v5777_v26  ;;  %v5858_v21 = vld [vmem:[%s8042_s1 + $0xcb0] ss:$8 sps:$4 sm:$0xff]   ;;  %v5863_v26 = vld [vmem:[%s8042_s1 + $0x4c4] ss:$8 sps:$4 sm:$0xff]  }
  0xfd   : > { %4046 = vmatprep.subr.bf16.mxu0 %v5780_v27  ;;  %v5866_v27 = vld [vmem:[%s8042_s1 + $0xcc4] ss:$8 sps:$4 sm:$0xff]  }
  0xff   : > { %3719 = vmatpush1.bf16.msra.mxu1 %v5775_v28  ;;  %v5861_v28 = vld [vmem:[%s8042_s1 + $0x4c0] ss:$8 sps:$4 sm:$0xff]  }
 0x100   : > { %4047 = vmatpush1.bf16.msra.mxu0 %v5778_v29  ;;  %3720 = vmatprep.subr.bf16.mxu1 %v5783_v30  ;;  %v5864_v29 = vld [vmem:[%s8042_s1 + $0xcc0] ss:$8 sps:$4 sm:$0xff]   ;;  %v5869_v30 = vld [vmem:[%s8042_s1 + $0x4d4] ss:$8 sps:$4 sm:$0xff]  }
 0x101   : > { %4048 = vmatprep.subr.bf16.mxu0 %v5786_v31  ;;  %v5872_v31 = vld [vmem:[%s8042_s1 + $0xcd4] ss:$8 sps:$4 sm:$0xff]  }
 0x103   : > { %3721 = vmatpush1.bf16.msra.mxu1 %v5781_v34  ;;  %v5867_v34 = vld [vmem:[%s8042_s1 + $0x4d0] ss:$8 sps:$4 sm:$0xff]  }
 0x104   : > { %4049 = vmatpush1.bf16.msra.mxu0 %v5784_v22  ;;  %3731 = vmatprep.subr.bf16.mxu1 %v5790_v35  ;;  %v5870_v22 = vld [vmem:[%s8042_s1 + $0xcd0] ss:$8 sps:$4 sm:$0xff]   ;;  %v5875_v35 = vld [vmem:[%s8042_s1 + $0x4e4] ss:$8 sps:$4 sm:$0xff]  }
 0x105   : > { %4059 = vmatprep.subr.bf16.mxu0 %v5794_v36  ;;  %v5878_v36 = vld [vmem:[%s8042_s1 + $0xce4] ss:$8 sps:$4 sm:$0xff]  }
 0x106   : > { %3723 = vmatmul.mubr.bf16.vlgmr.msra.gmra.mrb[0].mxu1 %v469_v38  ;;  %v5881_v38 = vld [vmem:[%s8042_s1 + $0x4f4] ss:$8 sps:$4 sm:$0xff]  }
 0x107   : > { %4051 = vmatmul.mubr.bf16.vlgmr.msra.gmra.mrb[0].mxu0 %v485_v39  ;;  %3732 = vmatpush1.bf16.msra.mxu1 %v5788_v40  ;;  %v5884_v39 = vld [vmem:[%s8042_s1 + $0xcf4] ss:$8 sps:$4 sm:$0xff]   ;;  %v7307_v40 = vld [vmem:[%s6428_s25 + $0x28] sm:$0x77] }
 0x108   : > { %4060 = vmatpush1.bf16.msra.mxu0 %v5792_v41  ;;  %3733 = vmatprep.subr.bf16.mxu1 %v5797_v42  ;;  %v7310_v41 = vld [vmem:[%s6428_s25 + $0x68] sm:$0x77]  ;;  %v5879_v42 = vld [vmem:[%s8042_s1 + $0x4f0] ss:$8 sps:$4 sm:$0xff]  }
 0x109   : > { %4061 = vmatprep.subr.bf16.mxu0 %v5800_v23  ;;  %3763 = vmatprep.mubr.bf16.mxu1 %v472_v25  ;;  %v5882_v23 = vld [vmem:[%s8042_s1 + $0xcf0] ss:$8 sps:$4 sm:$0xff]   ;;  %v5888_v25 = vld [vmem:[%s8042_s1 + $0x504] ss:$8 sps:$4 sm:$0xff]  }
 0x10a   : > { %4091 = vmatprep.mubr.bf16.mxu0 %v488_v43  ;;  %v5892_v43 = vld [vmem:[%s8042_s1 + $0xd04] ss:$8 sps:$4 sm:$0xff]  }
 0x10b   : > { %3734 = vmatpush1.bf16.msra.mxu1 %v5795_v44  ;;  %v436_v44 = vcombine.high %v7307_v40, %v7307_v40 }
 0x10c   : > { %4062 = vmatpush1.bf16.msra.mxu0 %v5798_v45  ;;  %3735 = vmatprep.subr.bf16.mxu1 %v5803_v46  ;;  %v444_v45 = vcombine.high %v7310_v41, %v7310_v41  ;;  %v471_v46 = vpack.c.bf16 %v7101_v32, %v7101_v32  ;;  %v5898_v32 = vld [vmem:[%s8042_s1 + $0xd14] ss:$8 sps:$4 sm:$0xff]  }
 0x10d   : > { %4063 = vmatprep.subr.bf16.mxu0 %v5806_v47  ;;  %v487_v47 = vpack.c.bf16 %v7104_v33, %v7104_v33  ;;  %v474_v33 = vpack.c.bf16 %v436_v44, %v436_v44  ;;  %v5971_v44 = vld [vmem:[%s8042_s1 + $0x5e0] ss:$8 sps:$4 sm:$0xff]  }
 0x10f   : > { %3736 = vmatpush1.bf16.msra.mxu1 %v5801_v48  ;;  %v5886_v48 = vld [vmem:[%s8042_s1 + $0x500] ss:$8 sps:$4 sm:$0xff]  }
 0x110   : > { %4064 = vmatpush1.bf16.msra.mxu0 %v5804_v49  ;;  %3737 = vmatprep.subr.bf16.mxu1 %v5809_v50  ;;  %v5890_v49 = vld [vmem:[%s8042_s1 + $0xd00] ss:$8 sps:$4 sm:$0xff]   ;;  %v5895_v50 = vld [vmem:[%s8042_s1 + $0x514] ss:$8 sps:$4 sm:$0xff]  }
 0x111   : > { %4065 = vmatprep.subr.bf16.mxu0 %v5812_v51  ;;  %v490_v51 = vpack.c.bf16 %v444_v45, %v444_v45  ;;  %v5974_v45 = vld [vmem:[%s8042_s1 + $0xde0] ss:$8 sps:$4 sm:$0xff]  }
 0x113   : > { %3738 = vmatpush1.bf16.msra.mxu1 %v5807_v52  ;;  %v5893_v52 = vld [vmem:[%s8042_s1 + $0x510] ss:$8 sps:$4 sm:$0xff]  }
 0x114   : > { %4066 = vmatpush1.bf16.msra.mxu0 %v5810_v53  ;;  %3739 = vmatprep.subr.bf16.mxu1 %v5815_v54  ;;  %v5896_v53 = vld [vmem:[%s8042_s1 + $0xd10] ss:$8 sps:$4 sm:$0xff]   ;;  %v5901_v54 = vld [vmem:[%s8042_s1 + $0x524] ss:$8 sps:$4 sm:$0xff]  }
 0x115   : > { %4067 = vmatprep.subr.bf16.mxu0 %v5818_v55  ;;  %v5904_v55 = vld [vmem:[%s8042_s1 + $0xd24] ss:$8 sps:$4 sm:$0xff]  }
 0x117   : > { %3740 = vmatpush1.bf16.msra.mxu1 %v5813_v56  ;;  %v5899_v56 = vld [vmem:[%s8042_s1 + $0x520] ss:$8 sps:$4 sm:$0xff]  }
 0x118   : > { %4068 = vmatpush1.bf16.msra.mxu0 %v5816_v57  ;;  %3741 = vmatprep.subr.bf16.mxu1 %v5821_v58  ;;  %v5902_v57 = vld [vmem:[%s8042_s1 + $0xd20] ss:$8 sps:$4 sm:$0xff]   ;;  %v5907_v58 = vld [vmem:[%s8042_s1 + $0x534] ss:$8 sps:$4 sm:$0xff]  }
 0x119   : > { %4069 = vmatprep.subr.bf16.mxu0 %v5824_v59  ;;  %v5910_v59 = vld [vmem:[%s8042_s1 + $0xd34] ss:$8 sps:$4 sm:$0xff]  }
 0x11b   : > { %3742 = vmatpush1.bf16.msra.mxu1 %v5819_v60  ;;  %v5905_v60 = vld [vmem:[%s8042_s1 + $0x530] ss:$8 sps:$4 sm:$0xff]  }
 0x11c   : > { %4070 = vmatpush1.bf16.msra.mxu0 %v5822_v61  ;;  %3743 = vmatprep.subr.bf16.mxu1 %v5827_v62  ;;  %v5908_v61 = vld [vmem:[%s8042_s1 + $0xd30] ss:$8 sps:$4 sm:$0xff]   ;;  %v5913_v62 = vld [vmem:[%s8042_s1 + $0x544] ss:$8 sps:$4 sm:$0xff]  }
 0x11d   : > { %4071 = vmatprep.subr.bf16.mxu0 %v5830_v63  ;;  %v5916_v63 = vld [vmem:[%s8042_s1 + $0xd44] ss:$8 sps:$4 sm:$0xff]  }
 0x11f   : > { %3744 = vmatpush1.bf16.msra.mxu1 %v5825_v0  ;;  %v5911_v0 = vld [vmem:[%s8042_s1 + $0x540] ss:$8 sps:$4 sm:$0xff]  }
 0x120   : > { %4072 = vmatpush1.bf16.msra.mxu0 %v5828_v1  ;;  %3745 = vmatprep.subr.bf16.mxu1 %v5833_v2  ;;  %v5914_v1 = vld [vmem:[%s8042_s1 + $0xd40] ss:$8 sps:$4 sm:$0xff]   ;;  %v5919_v2 = vld [vmem:[%s8042_s1 + $0x554] ss:$8 sps:$4 sm:$0xff]  }
 0x121   : > { %4073 = vmatprep.subr.bf16.mxu0 %v5836_v3  ;;  %v5922_v3 = vld [vmem:[%s8042_s1 + $0xd54] ss:$8 sps:$4 sm:$0xff]  }
 0x123   : > { %3746 = vmatpush1.bf16.msra.mxu1 %v5831_v4  ;;  %v5917_v4 = vld [vmem:[%s8042_s1 + $0x550] ss:$8 sps:$4 sm:$0xff]  }
 0x124   : > { %4074 = vmatpush1.bf16.msra.mxu0 %v5834_v5  ;;  %3747 = vmatprep.subr.bf16.mxu1 %v5839_v6  ;;  %v5920_v5 = vld [vmem:[%s8042_s1 + $0xd50] ss:$8 sps:$4 sm:$0xff]   ;;  %v5925_v6 = vld [vmem:[%s8042_s1 + $0x564] ss:$8 sps:$4 sm:$0xff]  }
 0x125   : > { %4075 = vmatprep.subr.bf16.mxu0 %v5842_v7  ;;  %v5928_v7 = vld [vmem:[%s8042_s1 + $0xd64] ss:$8 sps:$4 sm:$0xff]  }
 0x127   : > { %3748 = vmatpush1.bf16.msra.mxu1 %v5837_v8  ;;  %v5923_v8 = vld [vmem:[%s8042_s1 + $0x560] ss:$8 sps:$4 sm:$0xff]  }
 0x128   : > { %4076 = vmatpush1.bf16.msra.mxu0 %v5840_v9  ;;  %3749 = vmatprep.subr.bf16.mxu1 %v5845_v10  ;;  %v5926_v9 = vld [vmem:[%s8042_s1 + $0xd60] ss:$8 sps:$4 sm:$0xff]   ;;  %v5931_v10 = vld [vmem:[%s8042_s1 + $0x574] ss:$8 sps:$4 sm:$0xff]  }
 0x129   : > { %4077 = vmatprep.subr.bf16.mxu0 %v5848_v11  ;;  %v5934_v11 = vld [vmem:[%s8042_s1 + $0xd74] ss:$8 sps:$4 sm:$0xff]  }
 0x12b   : > { %3750 = vmatpush1.bf16.msra.mxu1 %v5843_v12  ;;  %v5929_v12 = vld [vmem:[%s8042_s1 + $0x570] ss:$8 sps:$4 sm:$0xff]  }
 0x12c   : > { %4078 = vmatpush1.bf16.msra.mxu0 %v5846_v13  ;;  %3751 = vmatprep.subr.bf16.mxu1 %v5851_v14  ;;  %v5932_v13 = vld [vmem:[%s8042_s1 + $0xd70] ss:$8 sps:$4 sm:$0xff]   ;;  %v5937_v14 = vld [vmem:[%s8042_s1 + $0x584] ss:$8 sps:$4 sm:$0xff]  }
 0x12d   : > { %4079 = vmatprep.subr.bf16.mxu0 %v5854_v15  ;;  %v5940_v15 = vld [vmem:[%s8042_s1 + $0xd84] ss:$8 sps:$4 sm:$0xff]  }
 0x12f   : > { %3752 = vmatpush1.bf16.msra.mxu1 %v5849_v16  ;;  %v5935_v16 = vld [vmem:[%s8042_s1 + $0x580] ss:$8 sps:$4 sm:$0xff]  }
 0x130   : > { %4080 = vmatpush1.bf16.msra.mxu0 %v5852_v17  ;;  %3753 = vmatprep.subr.bf16.mxu1 %v5857_v18  ;;  %v5938_v17 = vld [vmem:[%s8042_s1 + $0xd80] ss:$8 sps:$4 sm:$0xff]   ;;  %v5943_v18 = vld [vmem:[%s8042_s1 + $0x594] ss:$8 sps:$4 sm:$0xff]  }
 0x131   : > { %4081 = vmatprep.subr.bf16.mxu0 %v5860_v19  ;;  %v5946_v19 = vld [vmem:[%s8042_s1 + $0xd94] ss:$8 sps:$4 sm:$0xff]  }
 0x133   : > { %3754 = vmatpush1.bf16.msra.mxu1 %v5855_v20  ;;  %v5941_v20 = vld [vmem:[%s8042_s1 + $0x590] ss:$8 sps:$4 sm:$0xff]  }
 0x134   : > { %4082 = vmatpush1.bf16.msra.mxu0 %v5858_v21  ;;  %3755 = vmatprep.subr.bf16.mxu1 %v5863_v26  ;;  %v5944_v21 = vld [vmem:[%s8042_s1 + $0xd90] ss:$8 sps:$4 sm:$0xff]   ;;  %v5949_v26 = vld [vmem:[%s8042_s1 + $0x5a4] ss:$8 sps:$4 sm:$0xff]  }
 0x135   : > { %4083 = vmatprep.subr.bf16.mxu0 %v5866_v27  ;;  %v5952_v27 = vld [vmem:[%s8042_s1 + $0xda4] ss:$8 sps:$4 sm:$0xff]  }
 0x137   : > { %3756 = vmatpush1.bf16.msra.mxu1 %v5861_v28  ;;  %v5947_v28 = vld [vmem:[%s8042_s1 + $0x5a0] ss:$8 sps:$4 sm:$0xff]  }
 0x138   : > { %4084 = vmatpush1.bf16.msra.mxu0 %v5864_v29  ;;  %3757 = vmatprep.subr.bf16.mxu1 %v5869_v30  ;;  %v5950_v29 = vld [vmem:[%s8042_s1 + $0xda0] ss:$8 sps:$4 sm:$0xff]   ;;  %v5955_v30 = vld [vmem:[%s8042_s1 + $0x5b4] ss:$8 sps:$4 sm:$0xff]  }
 0x139   : > { %4085 = vmatprep.subr.bf16.mxu0 %v5872_v31  ;;  %v5958_v31 = vld [vmem:[%s8042_s1 + $0xdb4] ss:$8 sps:$4 sm:$0xff]  }
 0x13b   : > { %3758 = vmatpush1.bf16.msra.mxu1 %v5867_v34  ;;  %v5953_v34 = vld [vmem:[%s8042_s1 + $0x5b0] ss:$8 sps:$4 sm:$0xff]  }
 0x13c   : > { %4086 = vmatpush1.bf16.msra.mxu0 %v5870_v22  ;;  %3759 = vmatprep.subr.bf16.mxu1 %v5875_v35  ;;  %v5956_v22 = vld [vmem:[%s8042_s1 + $0xdb0] ss:$8 sps:$4 sm:$0xff]   ;;  %v5961_v35 = vld [vmem:[%s8042_s1 + $0x5c4] ss:$8 sps:$4 sm:$0xff]  }
 0x13d   : > { %4087 = vmatprep.subr.bf16.mxu0 %v5878_v36  ;;  %v5964_v36 = vld [vmem:[%s8042_s1 + $0xdc4] ss:$8 sps:$4 sm:$0xff]  }
 0x13f   : > { %3760 = vmatpush1.bf16.msra.mxu1 %v5873_v24  ;;  %v5959_v24 = vld [vmem:[%s8042_s1 + $0x5c0] ss:$8 sps:$4 sm:$0xff]  }
 0x140   : > { %4088 = vmatpush1.bf16.msra.mxu0 %v5876_v37  ;;  %3761 = vmatprep.subr.bf16.mxu1 %v5881_v38  ;;  %v5962_v37 = vld [vmem:[%s8042_s1 + $0xdc0] ss:$8 sps:$4 sm:$0xff]   ;;  %v5967_v38 = vld [vmem:[%s8042_s1 + $0x5d4] ss:$8 sps:$4 sm:$0xff]  }
 0x141   : > { %4089 = vmatprep.subr.bf16.mxu0 %v5884_v39  ;;  %v5970_v39 = vld [vmem:[%s8042_s1 + $0xdd4] ss:$8 sps:$4 sm:$0xff]  }
 0x143   : > { %3762 = vmatpush1.bf16.msra.mxu1 %v5879_v42  ;;  %v5965_v42 = vld [vmem:[%s8042_s1 + $0x5d0] ss:$8 sps:$4 sm:$0xff]  }
 0x144   : > { %4090 = vmatpush1.bf16.msra.mxu0 %v5882_v23  ;;  %3772 = vmatprep.subr.bf16.mxu1 %v5888_v25  ;;  %v5968_v23 = vld [vmem:[%s8042_s1 + $0xdd0] ss:$8 sps:$4 sm:$0xff]   ;;  %v5973_v25 = vld [vmem:[%s8042_s1 + $0x5e4] ss:$8 sps:$4 sm:$0xff]  }
 0x145   : > { %4100 = vmatprep.subr.bf16.mxu0 %v5892_v43  ;;  %v5976_v43 = vld [vmem:[%s8042_s1 + $0xde4] ss:$8 sps:$4 sm:$0xff]  }
 0x146   : > { %3764 = vmatmul.mubr.bf16.vlgmr.msra.gmra.mrb[0].mxu1 %v471_v46  ;;  %v5979_v46 = vld [vmem:[%s8042_s1 + $0x5f4] ss:$8 sps:$4 sm:$0xff]  }
 0x147   : > { %4092 = vmatmul.mubr.bf16.vlgmr.msra.gmra.mrb[0].mxu0 %v487_v47  ;;  %3773 = vmatpush1.bf16.msra.mxu1 %v5886_v48  ;;  %v5982_v47 = vld [vmem:[%s8042_s1 + $0xdf4] ss:$8 sps:$4 sm:$0xff]  }
 0x148   : > { %4101 = vmatpush1.bf16.msra.mxu0 %v5890_v49  ;;  %3774 = vmatprep.subr.bf16.mxu1 %v5895_v50  ;;  %v7513_v48 = vld [vmem:[%s6428_s25 + $0x30] sm:$0x77] }
 0x149   : > { %4102 = vmatprep.subr.bf16.mxu0 %v5898_v32  ;;  %3804 = vmatprep.mubr.bf16.mxu1 %v474_v33  ;;  %v7516_v49 = vld [vmem:[%s6428_s25 + $0x70] sm:$0x77]  ;;  %v5986_v33 = vld [vmem:[%s8042_s1 + $0x604] ss:$8 sps:$4 sm:$0xff]  }
 0x14a   : > { %4132 = vmatprep.mubr.bf16.mxu0 %v490_v51  ;;  %v5977_v50 = vld [vmem:[%s8042_s1 + $0x5f0] ss:$8 sps:$4 sm:$0xff]   ;;  %v5990_v51 = vld [vmem:[%s8042_s1 + $0xe04] ss:$8 sps:$4 sm:$0xff]  }
 0x14b   : > { %3775 = vmatpush1.bf16.msra.mxu1 %v5893_v52  ;;  %v5980_v32 = vld [vmem:[%s8042_s1 + $0xdf0] ss:$8 sps:$4 sm:$0xff]   ;;  %v437_v52 = vcombine.high %v7513_v48, %v7513_v48 }
 0x14c   : > { %4103 = vmatpush1.bf16.msra.mxu0 %v5896_v53  ;;  %3776 = vmatprep.subr.bf16.mxu1 %v5901_v54  ;;  %v445_v53 = vcombine.high %v7516_v49, %v7516_v49  ;;  %v473_v54 = vpack.c.bf16 %v7307_v40, %v7307_v40  ;;  %v5996_v40 = vld [vmem:[%s8042_s1 + $0xe14] ss:$8 sps:$4 sm:$0xff]  }
 0x14d   : > { %4104 = vmatprep.subr.bf16.mxu0 %v5904_v55  ;;  %v489_v55 = vpack.c.bf16 %v7310_v41, %v7310_v41  ;;  %v476_v41 = vpack.c.bf16 %v437_v52, %v437_v52  ;;  %v6069_v52 = vld [vmem:[%s8042_s1 + $0x6e0] ss:$8 sps:$4 sm:$0xff]  }
 0x14f   : > { %3777 = vmatpush1.bf16.msra.mxu1 %v5899_v56  ;;  %v5984_v56 = vld [vmem:[%s8042_s1 + $0x600] ss:$8 sps:$4 sm:$0xff]  }
 0x150   : > { %4105 = vmatpush1.bf16.msra.mxu0 %v5902_v57  ;;  %3778 = vmatprep.subr.bf16.mxu1 %v5907_v58  ;;  %v5988_v57 = vld [vmem:[%s8042_s1 + $0xe00] ss:$8 sps:$4 sm:$0xff]   ;;  %v5993_v58 = vld [vmem:[%s8042_s1 + $0x614] ss:$8 sps:$4 sm:$0xff]  }
 0x151   : > { %4106 = vmatprep.subr.bf16.mxu0 %v5910_v59  ;;  %v492_v59 = vpack.c.bf16 %v445_v53, %v445_v53  ;;  %v6072_v53 = vld [vmem:[%s8042_s1 + $0xee0] ss:$8 sps:$4 sm:$0xff]  }
 0x153   : > { %3779 = vmatpush1.bf16.msra.mxu1 %v5905_v60  ;;  %v5991_v60 = vld [vmem:[%s8042_s1 + $0x610] ss:$8 sps:$4 sm:$0xff]  }
 0x154   : > { %4107 = vmatpush1.bf16.msra.mxu0 %v5908_v61  ;;  %3780 = vmatprep.subr.bf16.mxu1 %v5913_v62  ;;  %v5994_v61 = vld [vmem:[%s8042_s1 + $0xe10] ss:$8 sps:$4 sm:$0xff]   ;;  %v5999_v62 = vld [vmem:[%s8042_s1 + $0x624] ss:$8 sps:$4 sm:$0xff]  }
 0x155   : > { %4108 = vmatprep.subr.bf16.mxu0 %v5916_v63  ;;  %v6002_v63 = vld [vmem:[%s8042_s1 + $0xe24] ss:$8 sps:$4 sm:$0xff]  }
 0x157   : > { %3781 = vmatpush1.bf16.msra.mxu1 %v5911_v0  ;;  %v5997_v0 = vld [vmem:[%s8042_s1 + $0x620] ss:$8 sps:$4 sm:$0xff]  }
 0x158   : > { %4109 = vmatpush1.bf16.msra.mxu0 %v5914_v1  ;;  %3782 = vmatprep.subr.bf16.mxu1 %v5919_v2  ;;  %v6000_v1 = vld [vmem:[%s8042_s1 + $0xe20] ss:$8 sps:$4 sm:$0xff]   ;;  %v6005_v2 = vld [vmem:[%s8042_s1 + $0x634] ss:$8 sps:$4 sm:$0xff]  }
 0x159   : > { %4110 = vmatprep.subr.bf16.mxu0 %v5922_v3  ;;  %v6008_v3 = vld [vmem:[%s8042_s1 + $0xe34] ss:$8 sps:$4 sm:$0xff]  }
 0x15b   : > { %3783 = vmatpush1.bf16.msra.mxu1 %v5917_v4  ;;  %v6003_v4 = vld [vmem:[%s8042_s1 + $0x630] ss:$8 sps:$4 sm:$0xff]  }
 0x15c   : > { %4111 = vmatpush1.bf16.msra.mxu0 %v5920_v5  ;;  %3784 = vmatprep.subr.bf16.mxu1 %v5925_v6  ;;  %v6006_v5 = vld [vmem:[%s8042_s1 + $0xe30] ss:$8 sps:$4 sm:$0xff]   ;;  %v6011_v6 = vld [vmem:[%s8042_s1 + $0x644] ss:$8 sps:$4 sm:$0xff]  }
 0x15d   : > { %4112 = vmatprep.subr.bf16.mxu0 %v5928_v7  ;;  %v6014_v7 = vld [vmem:[%s8042_s1 + $0xe44] ss:$8 sps:$4 sm:$0xff]  }
 0x15f   : > { %3785 = vmatpush1.bf16.msra.mxu1 %v5923_v8  ;;  %v6009_v8 = vld [vmem:[%s8042_s1 + $0x640] ss:$8 sps:$4 sm:$0xff]  }
 0x160   : > { %4113 = vmatpush1.bf16.msra.mxu0 %v5926_v9  ;;  %3786 = vmatprep.subr.bf16.mxu1 %v5931_v10  ;;  %v6012_v9 = vld [vmem:[%s8042_s1 + $0xe40] ss:$8 sps:$4 sm:$0xff]   ;;  %v6017_v10 = vld [vmem:[%s8042_s1 + $0x654] ss:$8 sps:$4 sm:$0xff]  }
 0x161   : > { %4114 = vmatprep.subr.bf16.mxu0 %v5934_v11  ;;  %v6020_v11 = vld [vmem:[%s8042_s1 + $0xe54] ss:$8 sps:$4 sm:$0xff]  }
 0x163   : > { %3787 = vmatpush1.bf16.msra.mxu1 %v5929_v12  ;;  %v6015_v12 = vld [vmem:[%s8042_s1 + $0x650] ss:$8 sps:$4 sm:$0xff]  }
 0x164   : > { %4115 = vmatpush1.bf16.msra.mxu0 %v5932_v13  ;;  %3788 = vmatprep.subr.bf16.mxu1 %v5937_v14  ;;  %v6018_v13 = vld [vmem:[%s8042_s1 + $0xe50] ss:$8 sps:$4 sm:$0xff]   ;;  %v6023_v14 = vld [vmem:[%s8042_s1 + $0x664] ss:$8 sps:$4 sm:$0xff]  }
 0x165   : > { %4116 = vmatprep.subr.bf16.mxu0 %v5940_v15  ;;  %v6026_v15 = vld [vmem:[%s8042_s1 + $0xe64] ss:$8 sps:$4 sm:$0xff]  }
 0x167   : > { %3789 = vmatpush1.bf16.msra.mxu1 %v5935_v16  ;;  %v6021_v16 = vld [vmem:[%s8042_s1 + $0x660] ss:$8 sps:$4 sm:$0xff]  }
 0x168   : > { %4117 = vmatpush1.bf16.msra.mxu0 %v5938_v17  ;;  %3790 = vmatprep.subr.bf16.mxu1 %v5943_v18  ;;  %v6024_v17 = vld [vmem:[%s8042_s1 + $0xe60] ss:$8 sps:$4 sm:$0xff]   ;;  %v6029_v18 = vld [vmem:[%s8042_s1 + $0x674] ss:$8 sps:$4 sm:$0xff]  }
 0x169   : > { %4118 = vmatprep.subr.bf16.mxu0 %v5946_v19  ;;  %v6032_v19 = vld [vmem:[%s8042_s1 + $0xe74] ss:$8 sps:$4 sm:$0xff]  }
 0x16b   : > { %3791 = vmatpush1.bf16.msra.mxu1 %v5941_v20  ;;  %v6027_v20 = vld [vmem:[%s8042_s1 + $0x670] ss:$8 sps:$4 sm:$0xff]  }
 0x16c   : > { %4119 = vmatpush1.bf16.msra.mxu0 %v5944_v21  ;;  %3792 = vmatprep.subr.bf16.mxu1 %v5949_v26  ;;  %v6030_v21 = vld [vmem:[%s8042_s1 + $0xe70] ss:$8 sps:$4 sm:$0xff]   ;;  %v6035_v26 = vld [vmem:[%s8042_s1 + $0x684] ss:$8 sps:$4 sm:$0xff]  }
 0x16d   : > { %4120 = vmatprep.subr.bf16.mxu0 %v5952_v27  ;;  %v6038_v27 = vld [vmem:[%s8042_s1 + $0xe84] ss:$8 sps:$4 sm:$0xff]  }
 0x16f   : > { %3793 = vmatpush1.bf16.msra.mxu1 %v5947_v28  ;;  %v6033_v28 = vld [vmem:[%s8042_s1 + $0x680] ss:$8 sps:$4 sm:$0xff]  }
 0x170   : > { %4121 = vmatpush1.bf16.msra.mxu0 %v5950_v29  ;;  %3794 = vmatprep.subr.bf16.mxu1 %v5955_v30  ;;  %v6036_v29 = vld [vmem:[%s8042_s1 + $0xe80] ss:$8 sps:$4 sm:$0xff]   ;;  %v6041_v30 = vld [vmem:[%s8042_s1 + $0x694] ss:$8 sps:$4 sm:$0xff]  }
 0x171   : > { %4122 = vmatprep.subr.bf16.mxu0 %v5958_v31  ;;  %v6044_v31 = vld [vmem:[%s8042_s1 + $0xe94] ss:$8 sps:$4 sm:$0xff]  }
 0x173   : > { %3795 = vmatpush1.bf16.msra.mxu1 %v5953_v34  ;;  %v6039_v34 = vld [vmem:[%s8042_s1 + $0x690] ss:$8 sps:$4 sm:$0xff]  }
 0x174   : > { %4123 = vmatpush1.bf16.msra.mxu0 %v5956_v22  ;;  %3796 = vmatprep.subr.bf16.mxu1 %v5961_v35  ;;  %v6042_v22 = vld [vmem:[%s8042_s1 + $0xe90] ss:$8 sps:$4 sm:$0xff]   ;;  %v6047_v35 = vld [vmem:[%s8042_s1 + $0x6a4] ss:$8 sps:$4 sm:$0xff]  }
 0x175   : > { %4124 = vmatprep.subr.bf16.mxu0 %v5964_v36  ;;  %v6050_v36 = vld [vmem:[%s8042_s1 + $0xea4] ss:$8 sps:$4 sm:$0xff]  }
 0x177   : > { %3797 = vmatpush1.bf16.msra.mxu1 %v5959_v24  ;;  %v6045_v24 = vld [vmem:[%s8042_s1 + $0x6a0] ss:$8 sps:$4 sm:$0xff]  }
 0x178   : > { %4125 = vmatpush1.bf16.msra.mxu0 %v5962_v37  ;;  %3798 = vmatprep.subr.bf16.mxu1 %v5967_v38  ;;  %v6048_v37 = vld [vmem:[%s8042_s1 + $0xea0] ss:$8 sps:$4 sm:$0xff]   ;;  %v6053_v38 = vld [vmem:[%s8042_s1 + $0x6b4] ss:$8 sps:$4 sm:$0xff]  }
 0x179   : > { %4126 = vmatprep.subr.bf16.mxu0 %v5970_v39  ;;  %v6056_v39 = vld [vmem:[%s8042_s1 + $0xeb4] ss:$8 sps:$4 sm:$0xff]  }
 0x17b   : > { %3799 = vmatpush1.bf16.msra.mxu1 %v5965_v42  ;;  %v6051_v42 = vld [vmem:[%s8042_s1 + $0x6b0] ss:$8 sps:$4 sm:$0xff]  }
 0x17c   : > { %4127 = vmatpush1.bf16.msra.mxu0 %v5968_v23  ;;  %3800 = vmatprep.subr.bf16.mxu1 %v5973_v25  ;;  %v6054_v23 = vld [vmem:[%s8042_s1 + $0xeb0] ss:$8 sps:$4 sm:$0xff]   ;;  %v6059_v25 = vld [vmem:[%s8042_s1 + $0x6c4] ss:$8 sps:$4 sm:$0xff]  }
 0x17d   : > { %4128 = vmatprep.subr.bf16.mxu0 %v5976_v43  ;;  %v6062_v43 = vld [vmem:[%s8042_s1 + $0xec4] ss:$8 sps:$4 sm:$0xff]  }
 0x17f   : > { %3801 = vmatpush1.bf16.msra.mxu1 %v5971_v44  ;;  %v6057_v44 = vld [vmem:[%s8042_s1 + $0x6c0] ss:$8 sps:$4 sm:$0xff]  }
 0x180   : > { %4129 = vmatpush1.bf16.msra.mxu0 %v5974_v45  ;;  %3802 = vmatprep.subr.bf16.mxu1 %v5979_v46  ;;  %v6060_v45 = vld [vmem:[%s8042_s1 + $0xec0] ss:$8 sps:$4 sm:$0xff]   ;;  %v6065_v46 = vld [vmem:[%s8042_s1 + $0x6d4] ss:$8 sps:$4 sm:$0xff]  }
 0x181   : > { %4130 = vmatprep.subr.bf16.mxu0 %v5982_v47  ;;  %v6068_v47 = vld [vmem:[%s8042_s1 + $0xed4] ss:$8 sps:$4 sm:$0xff]  }
 0x183   : > { %3803 = vmatpush1.bf16.msra.mxu1 %v5977_v50  ;;  %v6063_v50 = vld [vmem:[%s8042_s1 + $0x6d0] ss:$8 sps:$4 sm:$0xff]  }
 0x184   : > { %4131 = vmatpush1.bf16.msra.mxu0 %v5980_v32  ;;  %3813 = vmatprep.subr.bf16.mxu1 %v5986_v33  ;;  %v6066_v32 = vld [vmem:[%s8042_s1 + $0xed0] ss:$8 sps:$4 sm:$0xff]   ;;  %v6071_v33 = vld [vmem:[%s8042_s1 + $0x6e4] ss:$8 sps:$4 sm:$0xff]  }
 0x185   : > { %4141 = vmatprep.subr.bf16.mxu0 %v5990_v51  ;;  %v6074_v51 = vld [vmem:[%s8042_s1 + $0xee4] ss:$8 sps:$4 sm:$0xff]  }
 0x186   : > { %3805 = vmatmul.mubr.bf16.vlgmr.msra.gmra.mrb[0].mxu1 %v473_v54  ;;  %v6077_v54 = vld [vmem:[%s8042_s1 + $0x6f4] ss:$8 sps:$4 sm:$0xff]  }
 0x187   : > { %4133 = vmatmul.mubr.bf16.vlgmr.msra.gmra.mrb[0].mxu0 %v489_v55  ;;  %3814 = vmatpush1.bf16.msra.mxu1 %v5984_v56  ;;  %v6080_v55 = vld [vmem:[%s8042_s1 + $0xef4] ss:$8 sps:$4 sm:$0xff]  }
 0x188   : > { %4142 = vmatpush1.bf16.msra.mxu0 %v5988_v57  ;;  %3815 = vmatprep.subr.bf16.mxu1 %v5993_v58  ;;  %v7719_v56 = vld [vmem:[%s6428_s25 + $0x38] sm:$0x77] }
 0x189   : > { %4143 = vmatprep.subr.bf16.mxu0 %v5996_v40  ;;  %3845 = vmatprep.mubr.bf16.mxu1 %v476_v41  ;;  %v7722_v57 = vld [vmem:[%s6428_s25 + $0x78] sm:$0x77]  ;;  %v6084_v41 = vld [vmem:[%s8042_s1 + $0x704] ss:$8 sps:$4 sm:$0xff]   ;;  %s397_s25 = scalar_lea.vmem %s8052_s11, %s4755_s16 }
 0x18a   : > { %4173 = vmatprep.mubr.bf16.mxu0 %v492_v59  ;;  %v6075_v58 = vld [vmem:[%s8042_s1 + $0x6f0] ss:$8 sps:$4 sm:$0xff]   ;;  %v6088_v59 = vld [vmem:[%s8042_s1 + $0xf04] ss:$8 sps:$4 sm:$0xff]  }
 0x18b   : > { %3816 = vmatpush1.bf16.msra.mxu1 %v5991_v60  ;;  %v6078_v40 = vld [vmem:[%s8042_s1 + $0xef0] ss:$8 sps:$4 sm:$0xff]   ;;  %v438_v60 = vcombine.high %v7719_v56, %v7719_v56 }
 0x18c   : > { %4144 = vmatpush1.bf16.msra.mxu0 %v5994_v61  ;;  %3817 = vmatprep.subr.bf16.mxu1 %v5999_v62  ;;  %v446_v61 = vcombine.high %v7722_v57, %v7722_v57  ;;  %v475_v62 = vpack.c.bf16 %v7513_v48, %v7513_v48  ;;  %v6094_v48 = vld [vmem:[%s8042_s1 + $0xf14] ss:$8 sps:$4 sm:$0xff]  }
 0x18d   : > { %4145 = vmatprep.subr.bf16.mxu0 %v6002_v63  ;;  %v491_v63 = vpack.c.bf16 %v7516_v49, %v7516_v49  ;;  %v478_v49 = vpack.c.bf16 %v438_v60, %v438_v60  ;;  %v6167_v60 = vld [vmem:[%s8042_s1 + $0x7e0] ss:$8 sps:$4 sm:$0xff]  }
 0x18f   : > { %3818 = vmatpush1.bf16.msra.mxu1 %v5997_v0  ;;  %v6082_v0 = vld [vmem:[%s8042_s1 + $0x700] ss:$8 sps:$4 sm:$0xff]  }
 0x190   : > { %4146 = vmatpush1.bf16.msra.mxu0 %v6000_v1  ;;  %3819 = vmatprep.subr.bf16.mxu1 %v6005_v2  ;;  %v6086_v1 = vld [vmem:[%s8042_s1 + $0xf00] ss:$8 sps:$4 sm:$0xff]   ;;  %v6091_v2 = vld [vmem:[%s8042_s1 + $0x714] ss:$8 sps:$4 sm:$0xff]  }
 0x191   : > { %4147 = vmatprep.subr.bf16.mxu0 %v6008_v3  ;;  %v494_v3 = vpack.c.bf16 %v446_v61, %v446_v61  ;;  %v6170_v61 = vld [vmem:[%s8042_s1 + $0xfe0] ss:$8 sps:$4 sm:$0xff]  }
 0x193   : > { %3820 = vmatpush1.bf16.msra.mxu1 %v6003_v4  ;;  %v6089_v4 = vld [vmem:[%s8042_s1 + $0x710] ss:$8 sps:$4 sm:$0xff]  }
 0x194   : > { %4148 = vmatpush1.bf16.msra.mxu0 %v6006_v5  ;;  %3821 = vmatprep.subr.bf16.mxu1 %v6011_v6  ;;  %v6092_v5 = vld [vmem:[%s8042_s1 + $0xf10] ss:$8 sps:$4 sm:$0xff]   ;;  %v6097_v6 = vld [vmem:[%s8042_s1 + $0x724] ss:$8 sps:$4 sm:$0xff]  }
 0x195   : > { %4149 = vmatprep.subr.bf16.mxu0 %v6014_v7  ;;  %v6100_v7 = vld [vmem:[%s8042_s1 + $0xf24] ss:$8 sps:$4 sm:$0xff]  }
 0x197   : > { %3822 = vmatpush1.bf16.msra.mxu1 %v6009_v8  ;;  %v6095_v8 = vld [vmem:[%s8042_s1 + $0x720] ss:$8 sps:$4 sm:$0xff]  }
 0x198   : > { %4150 = vmatpush1.bf16.msra.mxu0 %v6012_v9  ;;  %3823 = vmatprep.subr.bf16.mxu1 %v6017_v10  ;;  %v6098_v9 = vld [vmem:[%s8042_s1 + $0xf20] ss:$8 sps:$4 sm:$0xff]   ;;  %v6103_v10 = vld [vmem:[%s8042_s1 + $0x734] ss:$8 sps:$4 sm:$0xff]  }
 0x199   : > { %4151 = vmatprep.subr.bf16.mxu0 %v6020_v11  ;;  %v6106_v11 = vld [vmem:[%s8042_s1 + $0xf34] ss:$8 sps:$4 sm:$0xff]  }
 0x19b   : > { %3824 = vmatpush1.bf16.msra.mxu1 %v6015_v12  ;;  %v6101_v12 = vld [vmem:[%s8042_s1 + $0x730] ss:$8 sps:$4 sm:$0xff]  }
 0x19c   : > { %4152 = vmatpush1.bf16.msra.mxu0 %v6018_v13  ;;  %3825 = vmatprep.subr.bf16.mxu1 %v6023_v14  ;;  %v6104_v13 = vld [vmem:[%s8042_s1 + $0xf30] ss:$8 sps:$4 sm:$0xff]   ;;  %v6109_v14 = vld [vmem:[%s8042_s1 + $0x744] ss:$8 sps:$4 sm:$0xff]  }
 0x19d   : > { %4153 = vmatprep.subr.bf16.mxu0 %v6026_v15  ;;  %v6112_v15 = vld [vmem:[%s8042_s1 + $0xf44] ss:$8 sps:$4 sm:$0xff]  }
 0x19f   : > { %3826 = vmatpush1.bf16.msra.mxu1 %v6021_v16  ;;  %v6107_v16 = vld [vmem:[%s8042_s1 + $0x740] ss:$8 sps:$4 sm:$0xff]  }
 0x1a0   : > { %4154 = vmatpush1.bf16.msra.mxu0 %v6024_v17  ;;  %3827 = vmatprep.subr.bf16.mxu1 %v6029_v18  ;;  %v6110_v17 = vld [vmem:[%s8042_s1 + $0xf40] ss:$8 sps:$4 sm:$0xff]   ;;  %v6115_v18 = vld [vmem:[%s8042_s1 + $0x754] ss:$8 sps:$4 sm:$0xff]  }
 0x1a1   : > { %4155 = vmatprep.subr.bf16.mxu0 %v6032_v19  ;;  %v6118_v19 = vld [vmem:[%s8042_s1 + $0xf54] ss:$8 sps:$4 sm:$0xff]  }
 0x1a3   : > { %3828 = vmatpush1.bf16.msra.mxu1 %v6027_v20  ;;  %v6113_v20 = vld [vmem:[%s8042_s1 + $0x750] ss:$8 sps:$4 sm:$0xff]  }
 0x1a4   : > { %4156 = vmatpush1.bf16.msra.mxu0 %v6030_v21  ;;  %3829 = vmatprep.subr.bf16.mxu1 %v6035_v26  ;;  %v6116_v21 = vld [vmem:[%s8042_s1 + $0xf50] ss:$8 sps:$4 sm:$0xff]   ;;  %v6121_v26 = vld [vmem:[%s8042_s1 + $0x764] ss:$8 sps:$4 sm:$0xff]  }
 0x1a5   : > { %4157 = vmatprep.subr.bf16.mxu0 %v6038_v27  ;;  %v6124_v27 = vld [vmem:[%s8042_s1 + $0xf64] ss:$8 sps:$4 sm:$0xff]  }
 0x1a7   : > { %3830 = vmatpush1.bf16.msra.mxu1 %v6033_v28  ;;  %v6119_v28 = vld [vmem:[%s8042_s1 + $0x760] ss:$8 sps:$4 sm:$0xff]  }
 0x1a8   : > { %4158 = vmatpush1.bf16.msra.mxu0 %v6036_v29  ;;  %3831 = vmatprep.subr.bf16.mxu1 %v6041_v30  ;;  %v6122_v29 = vld [vmem:[%s8042_s1 + $0xf60] ss:$8 sps:$4 sm:$0xff]   ;;  %v6127_v30 = vld [vmem:[%s8042_s1 + $0x774] ss:$8 sps:$4 sm:$0xff]  }
 0x1a9   : > { %4159 = vmatprep.subr.bf16.mxu0 %v6044_v31  ;;  %v6130_v31 = vld [vmem:[%s8042_s1 + $0xf74] ss:$8 sps:$4 sm:$0xff]  }
 0x1ab   : > { %3832 = vmatpush1.bf16.msra.mxu1 %v6039_v34  ;;  %v6125_v34 = vld [vmem:[%s8042_s1 + $0x770] ss:$8 sps:$4 sm:$0xff]  }
 0x1ac   : > { %4160 = vmatpush1.bf16.msra.mxu0 %v6042_v22  ;;  %3833 = vmatprep.subr.bf16.mxu1 %v6047_v35  ;;  %v6128_v22 = vld [vmem:[%s8042_s1 + $0xf70] ss:$8 sps:$4 sm:$0xff]   ;;  %v6133_v35 = vld [vmem:[%s8042_s1 + $0x784] ss:$8 sps:$4 sm:$0xff]  }
 0x1ad   : > { %4161 = vmatprep.subr.bf16.mxu0 %v6050_v36  ;;  %v6136_v36 = vld [vmem:[%s8042_s1 + $0xf84] ss:$8 sps:$4 sm:$0xff]  }
 0x1af   : > { %3834 = vmatpush1.bf16.msra.mxu1 %v6045_v24  ;;  %v6131_v24 = vld [vmem:[%s8042_s1 + $0x780] ss:$8 sps:$4 sm:$0xff]  }
 0x1b0   : > { %4162 = vmatpush1.bf16.msra.mxu0 %v6048_v37  ;;  %3835 = vmatprep.subr.bf16.mxu1 %v6053_v38  ;;  %v6134_v37 = vld [vmem:[%s8042_s1 + $0xf80] ss:$8 sps:$4 sm:$0xff]   ;;  %v6139_v38 = vld [vmem:[%s8042_s1 + $0x794] ss:$8 sps:$4 sm:$0xff]  }
 0x1b1   : > { %4163 = vmatprep.subr.bf16.mxu0 %v6056_v39  ;;  %v6142_v39 = vld [vmem:[%s8042_s1 + $0xf94] ss:$8 sps:$4 sm:$0xff]  }
 0x1b3   : > { %3836 = vmatpush1.bf16.msra.mxu1 %v6051_v42  ;;  %v6137_v42 = vld [vmem:[%s8042_s1 + $0x790] ss:$8 sps:$4 sm:$0xff]  }
 0x1b4   : > { %4164 = vmatpush1.bf16.msra.mxu0 %v6054_v23  ;;  %3837 = vmatprep.subr.bf16.mxu1 %v6059_v25  ;;  %v6140_v23 = vld [vmem:[%s8042_s1 + $0xf90] ss:$8 sps:$4 sm:$0xff]   ;;  %v6145_v25 = vld [vmem:[%s8042_s1 + $0x7a4] ss:$8 sps:$4 sm:$0xff]  }
 0x1b5   : > { %4165 = vmatprep.subr.bf16.mxu0 %v6062_v43  ;;  %v6148_v43 = vld [vmem:[%s8042_s1 + $0xfa4] ss:$8 sps:$4 sm:$0xff]  }
 0x1b7   : > { %3838 = vmatpush1.bf16.msra.mxu1 %v6057_v44  ;;  %v6143_v44 = vld [vmem:[%s8042_s1 + $0x7a0] ss:$8 sps:$4 sm:$0xff]  }
 0x1b8   : > { %4166 = vmatpush1.bf16.msra.mxu0 %v6060_v45  ;;  %3839 = vmatprep.subr.bf16.mxu1 %v6065_v46  ;;  %v6146_v45 = vld [vmem:[%s8042_s1 + $0xfa0] ss:$8 sps:$4 sm:$0xff]   ;;  %v6151_v46 = vld [vmem:[%s8042_s1 + $0x7b4] ss:$8 sps:$4 sm:$0xff]  }
 0x1b9   : > { %4167 = vmatprep.subr.bf16.mxu0 %v6068_v47  ;;  %v6154_v47 = vld [vmem:[%s8042_s1 + $0xfb4] ss:$8 sps:$4 sm:$0xff]  }
 0x1bb   : > { %3840 = vmatpush1.bf16.msra.mxu1 %v6063_v50  ;;  %v6149_v50 = vld [vmem:[%s8042_s1 + $0x7b0] ss:$8 sps:$4 sm:$0xff]  }
 0x1bc   : > { %4168 = vmatpush1.bf16.msra.mxu0 %v6066_v32  ;;  %3841 = vmatprep.subr.bf16.mxu1 %v6071_v33  ;;  %v6152_v32 = vld [vmem:[%s8042_s1 + $0xfb0] ss:$8 sps:$4 sm:$0xff]   ;;  %v6157_v33 = vld [vmem:[%s8042_s1 + $0x7c4] ss:$8 sps:$4 sm:$0xff]  }
 0x1bd   : > { %4169 = vmatprep.subr.bf16.mxu0 %v6074_v51  ;;  %v6160_v51 = vld [vmem:[%s8042_s1 + $0xfc4] ss:$8 sps:$4 sm:$0xff]  }
 0x1bf   : > { %3842 = vmatpush1.bf16.msra.mxu1 %v6069_v52  ;;  %v6155_v52 = vld [vmem:[%s8042_s1 + $0x7c0] ss:$8 sps:$4 sm:$0xff]  }
 0x1c0   : > { %4170 = vmatpush1.bf16.msra.mxu0 %v6072_v53  ;;  %3843 = vmatprep.subr.bf16.mxu1 %v6077_v54  ;;  %v6158_v53 = vld [vmem:[%s8042_s1 + $0xfc0] ss:$8 sps:$4 sm:$0xff]   ;;  %v6163_v54 = vld [vmem:[%s8042_s1 + $0x7d4] ss:$8 sps:$4 sm:$0xff]  }
 0x1c1   : > { %4171 = vmatprep.subr.bf16.mxu0 %v6080_v55  ;;  %v6166_v55 = vld [vmem:[%s8042_s1 + $0xfd4] ss:$8 sps:$4 sm:$0xff]  }
 0x1c3   : > { %3844 = vmatpush1.bf16.msra.mxu1 %v6075_v58  ;;  %v6161_v58 = vld [vmem:[%s8042_s1 + $0x7d0] ss:$8 sps:$4 sm:$0xff]  }
 0x1c4   : > { %4172 = vmatpush1.bf16.msra.mxu0 %v6078_v40  ;;  %3854 = vmatprep.subr.bf16.mxu1 %v6084_v41  ;;  %v6164_v40 = vld [vmem:[%s8042_s1 + $0xfd0] ss:$8 sps:$4 sm:$0xff]   ;;  %v6169_v41 = vld [vmem:[%s8042_s1 + $0x7e4] ss:$8 sps:$4 sm:$0xff]  }
 0x1c5   : > { %4182 = vmatprep.subr.bf16.mxu0 %v6088_v59  ;;  %v6172_v59 = vld [vmem:[%s8042_s1 + $0xfe4] ss:$8 sps:$4 sm:$0xff]  }
 0x1c6   : > { %3846 = vmatmul.mubr.bf16.vlgmr.msra.gmra.mrb[0].mxu1 %v475_v62  ;;  %v6175_v62 = vld [vmem:[%s8042_s1 + $0x7f4] ss:$8 sps:$4 sm:$0xff]  }
 0x1c7   : > { %4174 = vmatmul.mubr.bf16.vlgmr.msra.gmra.mrb[0].mxu0 %v491_v63  ;;  %3855 = vmatpush1.bf16.msra.mxu1 %v6082_v0  ;;  %v6178_v63 = vld [vmem:[%s8042_s1 + $0xff4] ss:$8 sps:$4 sm:$0xff]   ;;  %v6173_v0 = vld [vmem:[%s8042_s1 + $0x7f0] ss:$8 sps:$4 sm:$0xff]  }
 0x1c8   : > { %4183 = vmatpush1.bf16.msra.mxu0 %v6086_v1  ;;  %3856 = vmatprep.subr.bf16.mxu1 %v6091_v2  ;;  %v6176_v1 = vld [vmem:[%s8042_s1 + $0xff0] ss:$8 sps:$4 sm:$0xff]   ;;  %v477_v2 = vpack.c.bf16 %v7719_v56, %v7719_v56 }
 0x1c9   : > { %4184 = vmatprep.subr.bf16.mxu0 %v6094_v48  ;;  %3886 = vmatprep.mubr.bf16.mxu1 %v478_v49  ;;  %v493_v48 = vpack.c.bf16 %v7722_v57, %v7722_v57  ;;  %v6214_v49 = vmov 0  }
 0x1ca   : > { %4214 = vmatprep.mubr.bf16.mxu0 %v494_v3 }
 0x1cb   : > { %3857 = vmatpush1.bf16.msra.mxu1 %v6089_v4 }
 0x1cc   : > { %4185 = vmatpush1.bf16.msra.mxu0 %v6092_v5  ;;  %3858 = vmatprep.subr.bf16.mxu1 %v6097_v6  ;;  %v6215_v5 = vmov 65535  }
 0x1cd   : > { %4186 = vmatprep.subr.bf16.mxu0 %v6100_v7  ;;  %v4242_v6 = vsel %vm4240_vm0, 4294967295, %v6215_v5  ;;  %v4417_v5 = vld [vmem:[%s8048_s7 + $0x8] sm:$0xff] }
 0x1cf   : > { %3859 = vmatpush1.bf16.msra.mxu1 %v6095_v8 }
 0x1d0   : > { %4187 = vmatpush1.bf16.msra.mxu0 %v6098_v9  ;;  %3860 = vmatprep.subr.bf16.mxu1 %v6103_v10 }
 0x1d1   : > { %4188 = vmatprep.subr.bf16.mxu0 %v6106_v11 }
 0x1d3   : > { %3861 = vmatpush1.bf16.msra.mxu1 %v6101_v12  ;;  %v4243_v12 = vsel %vm4241_vm1, %v4242_v6, 0 }
 0x1d4   : > { %4189 = vmatpush1.bf16.msra.mxu0 %v6104_v13  ;;  %3862 = vmatprep.subr.bf16.mxu1 %v6109_v14 }
 0x1d5   : > { %4190 = vmatprep.subr.bf16.mxu0 %v6112_v15 }
 0x1d7   : > { %3863 = vmatpush1.bf16.msra.mxu1 %v6107_v16 }
 0x1d8   : > { %4191 = vmatpush1.bf16.msra.mxu0 %v6110_v17  ;;  %3864 = vmatprep.subr.bf16.mxu1 %v6115_v18  ;;  %v6181_v18 = vld [vmem:[%s8043_s2] sm:$0xff]  }
 0x1d9   : > { %4192 = vmatprep.subr.bf16.mxu0 %v6118_v19  ;;  %v6183_v19 = vld [vmem:[%s8047_s6 + $0x40] sm:$0xff]  }
 0x1db   : > { %3865 = vmatpush1.bf16.msra.mxu1 %v6113_v20  ;;  %v6184_v20 = vld [vmem:[%s8047_s6] sm:$0xff]  }
 0x1dc   : > { %4193 = vmatpush1.bf16.msra.mxu0 %v6116_v21  ;;  %3866 = vmatprep.subr.bf16.mxu1 %v6121_v26  ;;  %v6185_v21 = vld [vmem:[%s8047_s6 + $0x48] sm:$0xff]  }
 0x1dd   : > { %4194 = vmatprep.subr.bf16.mxu0 %v6124_v27  ;;  %v6186_v26 = vld [vmem:[%s8047_s6 + $0x8] sm:$0xff]   ;;  %v6187_v27 = vld [vmem:[%s8047_s6 + $0x50] sm:$0xff]  }
 0x1df   : > { %3867 = vmatpush1.bf16.msra.mxu1 %v6119_v28  ;;  %v6188_v28 = vld [vmem:[%s8047_s6 + $0x10] sm:$0xff]  }
 0x1e0   : > { %4195 = vmatpush1.bf16.msra.mxu0 %v6122_v29  ;;  %3868 = vmatprep.subr.bf16.mxu1 %v6127_v30  ;;  %v6189_v29 = vld [vmem:[%s8047_s6 + $0x58] sm:$0xff]  }
 0x1e1   : > { %4196 = vmatprep.subr.bf16.mxu0 %v6130_v31  ;;  %v6190_v30 = vld [vmem:[%s8047_s6 + $0x18] sm:$0xff]   ;;  %v6191_v31 = vld [vmem:[%s8047_s6 + $0x60] sm:$0xff]  }
 0x1e3   : > { %3869 = vmatpush1.bf16.msra.mxu1 %v6125_v34  ;;  %v6192_v34 = vld [vmem:[%s8047_s6 + $0x20] sm:$0xff]  }
 0x1e4   : > { %4197 = vmatpush1.bf16.msra.mxu0 %v6128_v22  ;;  %3870 = vmatprep.subr.bf16.mxu1 %v6133_v35  ;;  %v6193_v22 = vld [vmem:[%s8047_s6 + $0x68] sm:$0xff]  }
 0x1e5   : > { %4198 = vmatprep.subr.bf16.mxu0 %v6136_v36  ;;  %v6194_v35 = vld [vmem:[%s8047_s6 + $0x28] sm:$0xff]   ;;  %v6195_v36 = vld [vmem:[%s8047_s6 + $0x70] sm:$0xff]  }
 0x1e7   : > { %3871 = vmatpush1.bf16.msra.mxu1 %v6131_v24  ;;  %v4227_v24 = vld [vmem:[%s8044_s3] sm:$0xff] }
 0x1e8   : > { %4199 = vmatpush1.bf16.msra.mxu0 %v6134_v37  ;;  %3872 = vmatprep.subr.bf16.mxu1 %v6139_v38  ;;  %v4228_v37 = vld [vmem:[%s8044_s3 + $0x8] sm:$0xff] }
 0x1e9   : > { %4200 = vmatprep.subr.bf16.mxu0 %v6142_v39  ;;  %v4229_v39 = vld [vmem:[%s8044_s3 + $0x10] sm:$0xff] }
 0x1eb   : > { %3873 = vmatpush1.bf16.msra.mxu1 %v6137_v42 }
 0x1ec   : > { %4201 = vmatpush1.bf16.msra.mxu0 %v6140_v23  ;;  %3874 = vmatprep.subr.bf16.mxu1 %v6145_v25  ;;  %v4230_v25 = vld [vmem:[%s8044_s3 + $0x18] sm:$0xff] }
 0x1ed   : > { %4202 = vmatprep.subr.bf16.mxu0 %v6148_v43 }
 0x1ef   : > { %3875 = vmatpush1.bf16.msra.mxu1 %v6143_v44 }
 0x1f0   : > { %4203 = vmatpush1.bf16.msra.mxu0 %v6146_v45  ;;  %3876 = vmatprep.subr.bf16.mxu1 %v6151_v46 }
 0x1f1   : > { %4204 = vmatprep.subr.bf16.mxu0 %v6154_v47 }
 0x1f3   : > { %3877 = vmatpush1.bf16.msra.mxu1 %v6149_v50 }
 0x1f4   : > { %4205 = vmatpush1.bf16.msra.mxu0 %v6152_v32  ;;  %3878 = vmatprep.subr.bf16.mxu1 %v6157_v33 }
 0x1f5   : > { %4206 = vmatprep.subr.bf16.mxu0 %v6160_v51 }
 0x1f7   : > { %3879 = vmatpush1.bf16.msra.mxu1 %v6155_v52 }
 0x1f8   : > { %4207 = vmatpush1.bf16.msra.mxu0 %v6158_v53  ;;  %3880 = vmatprep.subr.bf16.mxu1 %v6163_v54  ;;  %v6182_v54 = vld [vmem:[%s8045_s4] sm:$0xff]  }
 0x1f9   : > { %4208 = vmatprep.subr.bf16.mxu0 %v6166_v55  ;;  %v6196_v55 = vld [vmem:[%s8047_s6 + $0x30] sm:$0xff]  }
 0x1fb   : > { %3881 = vmatpush1.bf16.msra.mxu1 %v6161_v58  ;;  %v6197_v58 = vld [vmem:[%s8047_s6 + $0x78] sm:$0xff]  }
 0x1fc   : > { %4209 = vmatpush1.bf16.msra.mxu0 %v6164_v40  ;;  %3882 = vmatprep.subr.bf16.mxu1 %v6169_v41  ;;  %v6198_v40 = vld [vmem:[%s8047_s6 + $0x38] sm:$0xff]  }
 0x1fd   : > { %4210 = vmatprep.subr.bf16.mxu0 %v6172_v59 }
 0x1ff   : > { %3883 = vmatpush1.bf16.msra.mxu1 %v6167_v60 }
 0x200   : > { %4211 = vmatpush1.bf16.msra.mxu0 %v6170_v61  ;;  %3884 = vmatprep.subr.bf16.mxu1 %v6175_v62 }
 0x201   : > { %4212 = vmatprep.subr.bf16.mxu0 %v6178_v63 }
 0x203   : > { %3885 = vmatpush1.bf16.msra.mxu1 %v6173_v0  ;;  %v6199_v0 = vld [vmem:[%s8045_s4 + $0x8] ss:$0 sps:$4 sm:$0x11]  }
 0x204   : > { %4213 = vmatpush1.bf16.msra.mxu0 %v6176_v1  ;;  %v6216_v1 = vmov 0.0  }
 0x205   : > { %5297 = vmatprep.subr.bf16.mxu0 %v6183_v19 }
 0x206   : > { %3887 = vmatmul.mubr.bf16.vlgmr.msra.gmra.mrb[0].mxu1 %v477_v2 }
 0x207   : > { %4215 = vmatmul.mubr.bf16.vlgmr.msra.gmra.mrb[0].mxu0 %v493_v48  ;;  %4282 = vmatprep.mubr.bf16.mxu1 %v6214_v49  ;;  %v4416_v48 = vld [vmem:[%s8048_s7] sm:$0xff] }
 0x208   : > { %5298 = vmatpush3.bf16.msra.mxu0 %v6184_v20 }
 0x209   : > { %5299 = vmatprep.subr.bf16.mxu0 %v6185_v21 }
 0x20c   : > { %5300 = vmatpush3.bf16.msra.mxu0 %v6186_v26 }
 0x20d   : > { %5301 = vmatprep.subr.bf16.mxu0 %v6187_v27 }
 0x210   : > { %5302 = vmatpush3.bf16.msra.mxu0 %v6188_v28 }
 0x211   : > { %5303 = vmatprep.subr.bf16.mxu0 %v6189_v29 }
 0x214   : > { %5304 = vmatpush3.bf16.msra.mxu0 %v6190_v30 }
 0x215   : > { %5305 = vmatprep.subr.bf16.mxu0 %v6191_v31 }
 0x218   : > { %5306 = vmatpush3.bf16.msra.mxu0 %v6192_v34 }
 0x219   : > { %5307 = vmatprep.subr.bf16.mxu0 %v6193_v22 }
 0x21c   : > { %5308 = vmatpush3.bf16.msra.mxu0 %v6194_v35 }
 0x21d   : > { %5309 = vmatprep.subr.bf16.mxu0 %v6195_v36 }
 0x220   : > { %5310 = vmatpush3.bf16.msra.mxu0 %v6196_v55 }
 0x221   : > { %5311 = vmatprep.subr.bf16.mxu0 %v6197_v58 }
 0x224   : > { %5312 = vmatpush3.bf16.msra.mxu0 %v6198_v40 }
 0x2d9   : > { %v3888_v3 = vpop.f32.mrb[0].mxu1 }
 0x2da   : > { %v4216_v4 = vpop.f32.mrb[0].mxu0  ;;  %v3890_v8 = vpop.f32.mrb[1].mxu1 }
 0x2db   : > { %v5327_v7 = vadd.f32 %v4216_v4, %v3888_v3  ;;  %v4218_v56 = vpop.f32.mrb[1].mxu0  ;;  %v3892_v10 = vpop.f32.mrb[2].mxu1 }
 0x2dc   : > { %v5328_v9 = vadd.f32 %v4218_v56, %v3890_v8  ;;  %v4220_v57 = vpop.f32.mrb[2].mxu0  ;;  %v3893_v13 = vpop.f32.mrb[3].mxu1 }
 0x2dd   : > { %v4225_v11 = vpack.c.bf16 %v5327_v7, %v5327_v7  ;;  %v4221_v14 = vpop.f32.mrb[3].mxu0 }
 0x2de   : > { %v4226_v15 = vpack.c.bf16 %v5328_v9, %v5328_v9 }
 0x2df   : > { %v4245_v17 = vand.u32 %v4243_v12, %v4225_v11  ;;  %v4558_v11 = vld [vmem:[%s8049_s8] sm:$0x7] }
 0x2e0   : > { %v4248_v16 = vand.u32 %v4243_v12, %v4226_v15  ;;  %v5274_v12 = vld.sshfl [vmem:[%s8046_s5] sm:$0x33 pattern:$0x76325410] }
 0x2e1   : > { %v4377_v13 = vcombine.high %v5274_v12, %v5274_v12 }
 0x2e2   : > { %4250 = vmatprep.subr.bf16.mxu1 %v4248_v16 }
 0x2e3   : > { %4251 = vmatpush1.bf16.msra.mxu1 %v4245_v17 }
 0x2e6   : > { %5269 = vmatmul.mubr.msk.bf16.vlgmr.msra.gmra.mrb[4].mxu1 %vm4236_vm2, %v6181_v18 }
 0x2e7   : > { %4349 = vmatprep.mubr.bf16.mxu1 %v6214_v49 }
 0x3b9   : > { %v4284_v38 = vpop.f32.mrb[4].mxu1 }
 0x3ba   : > { %v4285_v42 = vadd.f32 %v4284_v38, %v4227_v24  ;;  %v4286_v23 = vpop.f32.mrb[5].mxu1 }
 0x3bb   : > { %v4287_v43 = vadd.f32 %v4286_v23, %v4228_v37  ;;  %v4288_v44 = vpop.f32.mrb[6].mxu1 }
 0x3bc   : > { %v4289_v45 = vadd.f32 %v4288_v44, %v4229_v39  ;;  %v4290_v46 = vpop.f32.mrb[7].mxu1  ;;  %v4293_v50 = vmax.f32 %v4285_v42, 0.0 }
 0x3bd   : > { %v4291_v47 = vadd.f32 %v4290_v46, %v4230_v25  ;;  %v4294_v33 = vmax.f32 %v4287_v43, 0.0 }
 0x3be   : > { %v4295_v32 = vmax.f32 %v4289_v45, 0.0  ;;  %v4559_v45 = vld [vmem:[%s8050_s9] sm:$0x3f] }
 0x3bf   : > { %v4296_v51 = vmax.f32 %v4291_v47, 0.0 }
 0x3c0   : > { %v4297_v52 = vpack.c.bf16 %v4295_v32, %v4293_v50 }
 0x3c1   : > { %v4298_v53 = vpack.c.bf16 %v4296_v51, %v4294_v33 }
 0x3c3   : > { %4317 = vmatprep.subr.bf16.mxu1 %v4298_v53 }
 0x3c4   : > { %4318 = vmatpush1.bf16.msra.mxu1 %v4297_v52 }
 0x3c5   : > { %5321 = vmatprep.subr.bf16.mxu1 %v6216_v1 }
 0x3c7   : > { %5272 = vmatmul.mubr.msk.bf16.vlgmr.msra.gmra.mrb[8].mxu1 %vm4310_vm3, %v6182_v54 }
 0x3c8   : > { %4359 = vmatprep.mubr.bf16.mxu1 %v6214_v49 }
 0x3cf   : > { %5273 = vmatmul.mubr.msk.bf16.gmra.mrb[12].mxu1 %vm4310_vm3, %v6199_v0 }
 0x3d0   : > { %5323 = vmatprep.mubr.msk.bf16.mxu1 %vm6217_vm4, %v6216_v1 }
 0x49a   : > { %v4351_v41 = vpop.f32.mrb[8].mxu1 }
 0x49b   : > { %v4353_v59 = vpop.f32.mrb[9].mxu1 }
 0x49c   : > { %v4355_v60 = vpop.f32.mrb[10].mxu1 }
 0x49d   : > { %v4382_v61 = vpack.c.bf16 %v4355_v60, %v4351_v41  ;;  %v4357_v62 = vpop.f32.mrb[11].mxu1 }
 0x49e   : > { %v4383_v63 = vpack.c.bf16 %v4357_v62, %v4353_v59 }
 0x4a0   : > { %4546 = vmatprep.mubr.bf16.mxu0 %v4383_v63 }
 0x4a1   : > { %4547 = vmatmul.mubr.bf16.vlgmr.msra.gmra.mrb[4].mxu0 %v4382_v61 }
 0x4a2   : > { %v4361_v14 = vpop.f32.mrb[12].mxu1 }
 0x4a3   : > { %v4380_v15 = vadd.f32 %v5274_v12, %v4361_v14  ;;  %v4363_v16 = vpop.f32.mrb[13].mxu1 }
 0x4a4   : > { %v4381_v17 = vadd.f32 %v4377_v13, %v4363_v16  ;;  %v4365_v18 = vpop.f32.mrb[14].mxu1 }
 0x4a5   : > { %v4605_v19 = vrot.slane %v4380_v15, 7  ;;  %v4366_v20 = vpop.f32.mrb[15].mxu1 }
 0x4a6   : > { %v4606_v21 = vrot.slane %v4381_v17, 7 }
 0x4a7   : > { %v4609_v26 = vsub.f32 %v4380_v15, %v4605_v19 }
 0x4a8   : > { %v4610_v27 = vsub.f32 %v4381_v17, %v4606_v21 }
 0x4a9   : > { %v4611_v28 = vmul.f32 0.5, %v4609_v26 }
 0x4aa   : > { %v4612_v29 = vmul.f32 0.5, %v4610_v27 }
 0x4ab   : > { %6200 = vtanh.f32 %v4611_v28 }
 0x4ac   : > { %6202 = vtanh.f32 %v4612_v29 }
 0x4b5   : > { %v6201_v30 = vpop.eup %6200 }
 0x4b6   : > { %v6203_v31 = vpop.eup %6202  ;;  %v4615_v34 = vsub.f32 1.0, %v6201_v30  ;;  %v4619_v22 = vadd.f32 1.0, %v6201_v30 }
 0x4b7   : > { %v4616_v35 = vsub.f32 1.0, %v6203_v31  ;;  %v4620_v36 = vadd.f32 1.0, %v6203_v31 }
 0x4b8   : > { %v4617_v24 = vmul.f32 0.5, %v4615_v34  ;;  %v4621_v37 = vmul.f32 0.5, %v4619_v22 }
 0x4b9   : > { %v4618_v38 = vmul.f32 0.5, %v4616_v35  ;;  %v4622_v39 = vmul.f32 0.5, %v4620_v36 }
 0x4ba   : > { %v4625_v42 = vrot.slane %v4617_v24, 1 }
 0x4bb   : > { %v4626_v23 = vrot.slane %v4618_v38, 1 }
 0x4bc   : > { %v4629_v25 = vsel %vm4240_vm0, %v4625_v42, %v4621_v37 }
 0x4bd   : > { %v4630_v43 = vsel %vm4240_vm0, %v4626_v23, %v4622_v39 }
 0x4be   : > { %v4633_v44 = vcombine.low %v4629_v25, %v4630_v43 }
 0x4c0   : > { %5292 = vst.sshfl [vmem:[%s393_s13] sm:$0x33 pattern:$0x76325410] %v4633_v44 }
 0x574   : > { %v5313_v2 = vpop.f32.mrb[4].mxu0 }
 0x575   : > { %v5314_v49 = vpop.f32.mrb[5].mxu0 }
 0x576   : > { %v5315_v3 = vadd.f32 %v5314_v49, %v5313_v2  ;;  %v5316_v4 = vpop.f32.mrb[6].mxu0 }
 0x577   : > { %v5317_v6 = vpop.f32.mrb[7].mxu0 }
 0x578   : > { %v4549_v7 = vadd.f32 %v5315_v3, %v4416_v48  ;;  %v5318_v8 = vadd.f32 %v5317_v6, %v5316_v4 }
 0x57a   : > { %v4552_v56 = vadd.f32 %v5318_v8, %v4417_v5  ;;  %v4555_v9 = vmax.f32 %v4549_v7, 0.0 }
 0x57c   : > { %v4556_v10 = vmax.f32 %v4552_v56, 0.0 }
 0x57e   : > { %v4557_v57 = vpack.c.bf16 %v4556_v10, %v4555_v9 }
 0x580   : > { %5322 = vmatpush3.bf16.msra.mxu1 %v4557_v57 }
 0x583   : > { %5324 = vmatmul.mubr.msk.bf16.vlgmr.msra.gmra.mrb[16].mxu1 %vm4310_vm3, %v4558_v11 }
 0x656   : > { %v4597_v46 = vpop.f32.mrb[16].mxu1 }
 0x657   : > { %v4598_v47 = vadd.f32 %v4597_v46, %v4559_v45  ;;  %v5325_v50 = vpop.f32.mrb[17].mxu1 }
 0x658   : > { %v4600_v32 = vpop.f32.mrb[18].mxu1 }
 0x659   : > { %v4644_v33 = vrot.slane %v4598_v47, 7  ;;  %v5326_v51 = vpop.f32.mrb[19].mxu1 }
 0x65b   : > { %v4646_v52 = vsub.f32 %v4598_v47, %v4644_v33 }
 0x65d   : > { %v4647_v53 = vmul.f32 0.5, %v4646_v52 }
 0x65f   : > { %6204 = vtanh.f32 %v4647_v53 }
 0x669   : > { %v6205_v54 = vpop.eup %6204 }
 0x66a   : > { %v4649_v55 = vsub.f32 1.0, %v6205_v54  ;;  %v4651_v58 = vadd.f32 1.0, %v6205_v54 }
 0x66c   : > { %v4650_v40 = vmul.f32 0.5, %v4649_v55  ;;  %v4652_v41 = vmul.f32 0.5, %v4651_v58 }
 0x66e   : > { %v4654_v59 = vrot.slane %v4650_v40, 1 }
 0x670   : > { %v4656_v60 = vsel %vm4240_vm0, %v4654_v59, %v4652_v41 }
 0x671   : > { %v4657_v61 = vsel %vm4241_vm1, %v4656_v60, %v4598_v47 }
 0x672   : > { %4659 = vst.msk [vmem:[%s397_s25] sm:$0x3f] %vm4658_vm5, %v4657_v61 }
 0x673 PF: > { %s22_s17 = sadd.s32 1, %s6212_s17  }
 0x674   : > { %p19_p4 = scmp.ge.s32.totalorder %s22_s17, 4  }
 0x676   :  { %21 = sbr.rel (!%p19_p4) target bundleno = 1 (0x1), region = 102 }

</bundles_post_ra>
